<compile_context>
chip_gen: v7x
topology: tpu7x:2x2x1
jax: 0.10.0
libtpu: 0.0.40
codegen_flags: <defaults>
</compile_context>

<pallas_src>
import jax
import jax.numpy as jnp
import numpy as np
from jax.experimental import pallas as pl
from jax.experimental.pallas import tpu as pltpu

EPS = 1e-5
LANE = 128


def _rup(v, m):
    return ((v + m - 1) // m) * m


def _pad_channels(a, target):
    if a.shape[-1] == target:
        return a
    cfg = [(0, 0)] * (a.ndim - 1) + [(0, target - a.shape[-1])]
    return jnp.pad(a, cfg)


# ---------------------------------------------------------------------------
# Kernel factories
# ---------------------------------------------------------------------------
def _make_conv_stats_kernel(taps, Ho, Wo, cin_p, cout_p, has_proj):
    """conv1 (3x3, any stride via polyphase taps) + partial BN stats.
    Optionally also the 1x1 projection shortcut (centre tap) + its stats."""
    M = Ho * Wo  # one image per grid step

    def kernel(*refs):
        if has_proj:
            x_ref, w_ref, ws_ref, y_ref, st_ref, ys_ref, sts_ref = refs
        else:
            x_ref, w_ref, y_ref, st_ref = refs

        acc = jnp.zeros((M, cout_p), jnp.float32)
        for t, (ro, co) in enumerate(taps):
            patch = x_ref[:, ro:ro + Ho, co:co + Wo, :]          # (1,Ho,Wo,cin_p) f32
            p2 = patch.reshape(M, cin_p).astype(jnp.bfloat16)
            acc = acc + jnp.dot(p2, w_ref[t * cin_p:(t + 1) * cin_p, :],
                                preferred_element_type=jnp.float32)

        y_ref[...] = acc.reshape(1, Ho, Wo, cout_p)
        st_ref[0:1, :] = jnp.sum(acc, axis=0, keepdims=True)
        st_ref[1:2, :] = jnp.sum(acc * acc, axis=0, keepdims=True)
        st_ref[2:8, :] = jnp.zeros((6, cout_p), jnp.float32)

        if has_proj:
            ro, co = taps[4]                                      # centre tap == 1x1 conv
            patch = x_ref[:, ro:ro + Ho, co:co + Wo, :]
            p2 = patch.reshape(M, cin_p).astype(jnp.bfloat16)
            sacc = jnp.dot(p2, ws_ref[...], preferred_element_type=jnp.float32)
            ys_ref[...] = sacc.reshape(1, Ho, Wo, cout_p)
            sts_ref[0:1, :] = jnp.sum(sacc, axis=0, keepdims=True)
            sts_ref[1:2, :] = jnp.sum(sacc * sacc, axis=0, keepdims=True)
            sts_ref[2:8, :] = jnp.zeros((6, cout_p), jnp.float32)

    return kernel


def _make_bn_relu_conv_kernel(Ho, Wo, cp):
    """bn1 (precomputed scale/shift) + relu + conv2 (3x3, stride 1, halo in VMEM)
    + partial BN2 stats.  The normalized activation never touches HBM."""
    M = Ho * Wo

    def kernel(y1_ref, sc_ref, sh_ref, w_ref, y2_ref, st_ref, pad_ref):
        o1 = jnp.maximum(y1_ref[...] * sc_ref[...] + sh_ref[...], 0.0)
        pad_ref[...] = jnp.zeros((1, Ho + 2, Wo + 2, cp), jnp.float32)
        pad_ref[:, 1:1 + Ho, 1:1 + Wo, :] = o1
        acc = jnp.zeros((M, cp), jnp.float32)
        for t in range(9):
            i, j = t // 3, t % 3
            patch = pad_ref[:, i:i + Ho, j:j + Wo, :]
            p2 = patch.reshape(M, cp).astype(jnp.bfloat16)
            acc = acc + jnp.dot(p2, w_ref[t * cp:(t + 1) * cp, :],
                                preferred_element_type=jnp.float32)
        y2_ref[...] = acc.reshape(1, Ho, Wo, cp)
        st_ref[0:1, :] = jnp.sum(acc, axis=0, keepdims=True)
        st_ref[1:2, :] = jnp.sum(acc * acc, axis=0, keepdims=True)
        st_ref[2:8, :] = jnp.zeros((6, cp), jnp.float32)

    return kernel


def _make_finalize_kernel(has_proj):
    """bn2 + shortcut add + relu (shortcut BN fused when projecting)."""
    if has_proj:
        def kernel(y2_ref, sc2_ref, sh2_ref, ys_ref, scs_ref, shs_ref, out_ref):
            main = y2_ref[...] * sc2_ref[...] + sh2_ref[...]
            short = ys_ref[...] * scs_ref[...] + shs_ref[...]
            out_ref[...] = jnp.maximum(main + short, 0.0)
    else:
        def kernel(y2_ref, sc2_ref, sh2_ref, xs_ref, out_ref):
            main = y2_ref[...] * sc2_ref[...] + sh2_ref[...]
            out_ref[...] = jnp.maximum(main + xs_ref[...], 0.0)
    return kernel


# ---------------------------------------------------------------------------
# Wrapper helpers
# ---------------------------------------------------------------------------
def _bn_coeffs(stats, gamma, beta, count):
    # stats: (8*G, Cp); rows k*8 hold per-tile sums, rows k*8+1 sums of squares.
    ssum = jnp.sum(stats[0::8], axis=0)
    ssq = jnp.sum(stats[1::8], axis=0)
    mean = ssum / count
    var = jnp.maximum(ssq / count - mean * mean, 0.0)
    scale = gamma * jax.lax.rsqrt(var + EPS)
    shift = beta - mean * scale
    return scale.reshape(1, -1), shift.reshape(1, -1)


def _prep_conv_weight(w, in_p, out_p):
    # (out, in, kh, kw) -> (kh*kw*in_p, out_p), per-tap row blocks, bf16 for the MXU.
    o, i, kh, kw = w.shape
    wt = jnp.transpose(w, (2, 3, 1, 0)).reshape(kh * kw, i, o)
    wt = jnp.pad(wt, ((0, 0), (0, in_p - i), (0, out_p - o)))
    return wt.reshape(kh * kw * in_p, out_p).astype(jnp.bfloat16)


def basic_block_forward(x_nchw, params, stride):
    """BasicBlock forward. x_nchw: (N, Cin, H, W) f32 -> (N, planes, Ho, Wo)."""
    x = jnp.transpose(x_nchw, (0, 2, 3, 1)).astype(jnp.float32)   # NHWC
    N, H, W, cin = x.shape
    planes = params["w1"].shape[0]
    s = int(stride)
    cin_p = _rup(cin, LANE)
    cp = _rup(planes, LANE)
    Ho = (H - 1) // s + 1
    Wo = (W - 1) // s + 1
    has_proj = (s != 1) or (cin != planes)

    # ---- polyphase-folded, zero-padded input (replaces HBM im2col) ----------
    Lh = Ho + (2 // s)
    Lw = Wo + (2 // s)
    xpad = jnp.pad(x, ((0, 0), (1, s * Lh - H - 1), (1, s * Lw - W - 1), (0, 0)))
    xpad = _pad_channels(xpad, cin_p)
    phases = [xpad[:, a::s, b::s, :] for a in range(s) for b in range(s)]
    xph = jnp.concatenate(phases, axis=1)            # (N, s*s*Lh, Lw, cin_p) f32
    taps = [(((i % s) * s + (j % s)) * Lh + i // s, j // s)
            for i in range(3) for j in range(3)]

    # ---- weights / BN params (channel-padded) --------------------------------
    w1m = _prep_conv_weight(params["w1"], cin_p, cp)
    w2m = _prep_conv_weight(params["w2"], cp, cp)
    g1 = jnp.pad(params["g1"], (0, cp - planes))
    b1 = jnp.pad(params["b1"], (0, cp - planes))
    g2 = jnp.pad(params["g2"], (0, cp - planes))
    b2 = jnp.pad(params["b2"], (0, cp - planes))

    G = N                                            # one image per grid step
    count = float(N * Ho * Wo)
    cparams = pltpu.CompilerParams(dimension_semantics=("parallel",))

    xph_spec = pl.BlockSpec((1, s * s * Lh, Lw, cin_p), lambda i: (i, 0, 0, 0))
    tile_spec = pl.BlockSpec((1, Ho, Wo, cp), lambda i: (i, 0, 0, 0))
    st_spec = pl.BlockSpec((8, cp), lambda i: (i, 0))
    vec_spec = pl.BlockSpec((1, cp), lambda i: (0, 0))
    w1_spec = pl.BlockSpec(w1m.shape, lambda i: (0, 0))
    w2_spec = pl.BlockSpec(w2m.shape, lambda i: (0, 0))

    tile_shape = jax.ShapeDtypeStruct((N, Ho, Wo, cp), jnp.float32)
    st_shape = jax.ShapeDtypeStruct((8 * G, cp), jnp.float32)

    # ---- pass 1: conv1 (+ projection shortcut) + partial stats ---------------
    k1 = _make_conv_stats_kernel(taps, Ho, Wo, cin_p, cp, has_proj)
    if has_proj:
        wsm = _prep_conv_weight(params["ws"], cin_p, cp)
        gs = jnp.pad(params["gs"], (0, cp - planes))
        bs = jnp.pad(params["bs"], (0, cp - planes))
        y1, st1, ys, sts = pl.pallas_call(
            k1,
            out_shape=(tile_shape, st_shape, tile_shape, st_shape),
            grid=(G,),
            in_specs=[xph_spec, w1_spec, pl.BlockSpec(wsm.shape, lambda i: (0, 0))],
            out_specs=(tile_spec, st_spec, tile_spec, st_spec),
            compiler_params=cparams,
        )(xph, w1m, wsm)
        scs, shs = _bn_coeffs(sts, gs, bs, count)
    else:
        y1, st1 = pl.pallas_call(
            k1,
            out_shape=(tile_shape, st_shape),
            grid=(G,),
            in_specs=[xph_spec, w1_spec],
            out_specs=(tile_spec, st_spec),
            compiler_params=cparams,
        )(xph, w1m)
    sc1, sh1 = _bn_coeffs(st1, g1, b1, count)

    # ---- pass 2: bn1 + relu + conv2 (halo kept in VMEM) + partial stats ------
    k2 = _make_bn_relu_conv_kernel(Ho, Wo, cp)
    y2, st2 = pl.pallas_call(
        k2,
        out_shape=(tile_shape, st_shape),
        grid=(G,),
        in_specs=[tile_spec, vec_spec, vec_spec, w2_spec],
        out_specs=(tile_spec, st_spec),
        scratch_shapes=[pltpu.VMEM((1, Ho + 2, Wo + 2, cp), jnp.float32)],
        compiler_params=cparams,
    )(y1, sc1, sh1, w2m)
    sc2, sh2 = _bn_coeffs(st2, g2, b2, count)

    # ---- pass 3: bn2 + shortcut add + relu ------------------------------------
    k3 = _make_finalize_kernel(has_proj)
    if has_proj:
        out = pl.pallas_call(
            k3, out_shape=tile_shape, grid=(G,),
            in_specs=[tile_spec, vec_spec, vec_spec, tile_spec, vec_spec, vec_spec],
            out_specs=tile_spec, compiler_params=cparams,
        )(y2, sc2, sh2, ys, scs, shs)
    else:
        x_id = _pad_channels(x, cp)                  # identity shortcut (cin == planes)
        out = pl.pallas_call(
            k3, out_shape=tile_shape, grid=(G,),
            in_specs=[tile_spec, vec_spec, vec_spec, tile_spec],
            out_specs=tile_spec, compiler_params=cparams,
        )(y2, sc2, sh2, x_id)

    out = out[..., :planes]
    return jnp.transpose(out, (0, 3, 1, 2))          # back to NCHW


# ---------------------------------------------------------------------------
# Pure-JAX reference (training-mode BN with batch statistics)
# ---------------------------------------------------------------------------
def _reference(x, params, stride):
    def conv(x, w, s, pad):
        return jax.lax.conv_general_dilated(
            x, w, (s, s), [(pad, pad), (pad, pad)],
            dimension_numbers=("NCHW", "OIHW", "NCHW"))

    def bn(y, g, b):
        mean = jnp.mean(y, axis=(0, 2, 3), keepdims=True)
        var = jnp.mean((y - mean) ** 2, axis=(0, 2, 3), keepdims=True)
        return (g.reshape(1, -1, 1, 1) * (y - mean) * jax.lax.rsqrt(var + EPS)
                + b.reshape(1, -1, 1, 1))

    out = jax.nn.relu(bn(conv(x, params["w1"], stride, 1), params["g1"], params["b1"]))
    out = bn(conv(out, params["w2"], 1, 1), params["g2"], params["b2"])
    if stride != 1 or x.shape[1] != params["w1"].shape[0]:
        sc = bn(conv(x, params["ws"], stride, 0), params["gs"], params["bs"])
    else:
        sc = x
    return jax.nn.relu(out + sc)


if __name__ == "__main__":
    def make_params(key, cin, planes, with_proj):
        ks = jax.random.split(key, 9)
        p = {
            "w1": jax.random.normal(ks[0], (planes, cin, 3, 3), jnp.float32) * 0.2,
            "g1": jax.random.normal(ks[1], (planes,), jnp.float32) * 0.1 + 1.0,
            "b1": jax.random.normal(ks[2], (planes,), jnp.float32) * 0.1,
            "w2": jax.random.normal(ks[3], (planes, planes, 3, 3), jnp.float32) * 0.2,
            "g2": jax.random.normal(ks[4], (planes,), jnp.float32) * 0.1 + 1.0,
            "b2": jax.random.normal(ks[5], (planes,), jnp.float32) * 0.1,
        }
        if with_proj:
            p["ws"] = jax.random.normal(ks[6], (planes, cin, 1, 1), jnp.float32) * 0.2
            p["gs"] = jax.random.normal(ks[7], (planes,), jnp.float32) * 0.1 + 1.0
            p["bs"] = jax.random.normal(ks[8], (planes,), jnp.float32) * 0.1
        return p

    key = jax.random.PRNGKey(0)
    ka, kb, kc, kd = jax.random.split(key, 4)

    # Case 1: stride-2 projection-shortcut block: (2,4,16,16) -> (2,8,8,8)
    N, CIN, H, W, PLANES, STRIDE = 2, 4, 16, 16, 8, 2
    params = make_params(ka, CIN, PLANES, True)
    x = jax.random.normal(kb, (N, CIN, H, W), jnp.float32)
    out = jax.block_until_ready(basic_block_forward(x, params, STRIDE))
    ref = jax.block_until_ready(_reference(x, params, STRIDE))
    assert out.shape == (N, PLANES, H // STRIDE, W // STRIDE), out.shape
    np.testing.assert_allclose(np.asarray(out), np.asarray(ref), rtol=2e-2, atol=2e-2)

    # Case 2: stride-1 identity-shortcut block: (2,8,16,16) -> (2,8,16,16)
    N, CIN, H, W, PLANES, STRIDE = 2, 8, 16, 16, 8, 1
    params = make_params(kc, CIN, PLANES, False)
    x = jax.random.normal(kd, (N, CIN, H, W), jnp.float32)
    out = jax.block_until_ready(basic_block_forward(x, params, STRIDE))
    ref = jax.block_until_ready(_reference(x, params, STRIDE))
    assert out.shape == (N, PLANES, H, W), out.shape
    np.testing.assert_allclose(np.asarray(out), np.asarray(ref), rtol=2e-2, atol=2e-2)

    print("KERNEL_OK")
</pallas_src>

<mosaic_0001>
module attributes {stable_mosaic.version = 11 : i64} {
  func.func @kernel(%arg0: i32, %arg1: memref<1x36x9x128xf32, #tpu.memory_space<vmem>>, %arg2: memref<1152x128xbf16, #tpu.memory_space<vmem>>, %arg3: memref<128x128xbf16, #tpu.memory_space<vmem>>, %arg4: memref<1x8x8x128xf32, #tpu.memory_space<vmem>>, %arg5: memref<8x128xf32, #tpu.memory_space<vmem>>, %arg6: memref<1x8x8x128xf32, #tpu.memory_space<vmem>>, %arg7: memref<8x128xf32, #tpu.memory_space<vmem>>) attributes {dimension_semantics = [#tpu.dimension_semantics<parallel>], iteration_bounds = array<i64: 2>, scalar_prefetch = 0 : i64, scratch_operands = 0 : i64, tpu.core_type = #tpu.core_type<tc>, window_params = [{transform_indices = @transform_0, window_bounds = array<i64: 1, 36, 9, 128>}, {pipeline_mode = #tpu.pipeline_mode<synchronous>, transform_indices = @transform_1, window_bounds = array<i64: 1152, 128>}, {pipeline_mode = #tpu.pipeline_mode<synchronous>, transform_indices = @transform_2, window_bounds = array<i64: 128, 128>}, {transform_indices = @transform_3, window_bounds = array<i64: 1, 8, 8, 128>}, {transform_indices = @transform_4, window_bounds = array<i64: 8, 128>}, {transform_indices = @transform_5, window_bounds = array<i64: 1, 8, 8, 128>}, {transform_indices = @transform_6, window_bounds = array<i64: 8, 128>}]} {
    %cst = arith.constant 0.000000e+00 : f32
    %0 = vector.broadcast %cst : f32 to vector<64x128xf32>
    %c0 = arith.constant 0 : index
    %c0_0 = arith.constant 0 : index
    %c0_1 = arith.constant 0 : index
    %c0_2 = arith.constant 0 : index
    %1 = vector.load %arg1[%c0, %c0_0, %c0_1, %c0_2] : memref<1x36x9x128xf32, #tpu.memory_space<vmem>>, vector<1x8x8x128xf32>
    %2 = vector.shape_cast %1 : vector<1x8x8x128xf32> to vector<64x128xf32>
    %3 = arith.truncf %2 : vector<64x128xf32> to vector<64x128xbf16>
    %c0_3 = arith.constant 0 : index
    %c0_4 = arith.constant 0 : index
    %4 = vector.load %arg2[%c0_3, %c0_4] : memref<1152x128xbf16, #tpu.memory_space<vmem>>, vector<128x128xbf16>
    %cst_5 = arith.constant dense<0.000000e+00> : vector<64x128xf32>
    %5 = tpu.matmul %3, %4, %cst_5 {dimension_numbers = #tpu.dot_dimension_numbers<[1], [0], [0], [1], [0, 0, 1, 1], [], []>} : vector<64x128xbf16>, vector<128x128xbf16>, vector<64x128xf32> -> vector<64x128xf32>
    %6 = arith.addf %0, %5 : vector<64x128xf32>
    %c0_6 = arith.constant 0 : index
    %c9 = arith.constant 9 : index
    %c0_7 = arith.constant 0 : index
    %c0_8 = arith.constant 0 : index
    %7 = vector.load %arg1[%c0_6, %c9, %c0_7, %c0_8] : memref<1x36x9x128xf32, #tpu.memory_space<vmem>>, vector<1x8x8x128xf32>
    %8 = vector.shape_cast %7 : vector<1x8x8x128xf32> to vector<64x128xf32>
    %9 = arith.truncf %8 : vector<64x128xf32> to vector<64x128xbf16>
    %c128 = arith.constant 128 : index
    %c0_9 = arith.constant 0 : index
    %10 = vector.load %arg2[%c128, %c0_9] : memref<1152x128xbf16, #tpu.memory_space<vmem>>, vector<128x128xbf16>
    %cst_10 = arith.constant dense<0.000000e+00> : vector<64x128xf32>
    %11 = tpu.matmul %9, %10, %cst_10 {dimension_numbers = #tpu.dot_dimension_numbers<[1], [0], [0], [1], [0, 0, 1, 1], [], []>} : vector<64x128xbf16>, vector<128x128xbf16>, vector<64x128xf32> -> vector<64x128xf32>
    %12 = arith.addf %6, %11 : vector<64x128xf32>
    %c0_11 = arith.constant 0 : index
    %c0_12 = arith.constant 0 : index
    %c1 = arith.constant 1 : index
    %c0_13 = arith.constant 0 : index
    %13 = vector.load %arg1[%c0_11, %c0_12, %c1, %c0_13] : memref<1x36x9x128xf32, #tpu.memory_space<vmem>>, vector<1x8x8x128xf32>
    %14 = vector.shape_cast %13 : vector<1x8x8x128xf32> to vector<64x128xf32>
    %15 = arith.truncf %14 : vector<64x128xf32> to vector<64x128xbf16>
    %c256 = arith.constant 256 : index
    %c0_14 = arith.constant 0 : index
    %16 = vector.load %arg2[%c256, %c0_14] : memref<1152x128xbf16, #tpu.memory_space<vmem>>, vector<128x128xbf16>
    %cst_15 = arith.constant dense<0.000000e+00> : vector<64x128xf32>
    %17 = tpu.matmul %15, %16, %cst_15 {dimension_numbers = #tpu.dot_dimension_numbers<[1], [0], [0], [1], [0, 0, 1, 1], [], []>} : vector<64x128xbf16>, vector<128x128xbf16>, vector<64x128xf32> -> vector<64x128xf32>
    %18 = arith.addf %12, %17 : vector<64x128xf32>
    %c0_16 = arith.constant 0 : index
    %c18 = arith.constant 18 : index
    %c0_17 = arith.constant 0 : index
    %c0_18 = arith.constant 0 : index
    %19 = vector.load %arg1[%c0_16, %c18, %c0_17, %c0_18] : memref<1x36x9x128xf32, #tpu.memory_space<vmem>>, vector<1x8x8x128xf32>
    %20 = vector.shape_cast %19 : vector<1x8x8x128xf32> to vector<64x128xf32>
    %21 = arith.truncf %20 : vector<64x128xf32> to vector<64x128xbf16>
    %c384 = arith.constant 384 : index
    %c0_19 = arith.constant 0 : index
    %22 = vector.load %arg2[%c384, %c0_19] : memref<1152x128xbf16, #tpu.memory_space<vmem>>, vector<128x128xbf16>
    %cst_20 = arith.constant dense<0.000000e+00> : vector<64x128xf32>
    %23 = tpu.matmul %21, %22, %cst_20 {dimension_numbers = #tpu.dot_dimension_numbers<[1], [0], [0], [1], [0, 0, 1, 1], [], []>} : vector<64x128xbf16>, vector<128x128xbf16>, vector<64x128xf32> -> vector<64x128xf32>
    %24 = arith.addf %18, %23 : vector<64x128xf32>
    %c0_21 = arith.constant 0 : index
    %c27 = arith.constant 27 : index
    %c0_22 = arith.constant 0 : index
    %c0_23 = arith.constant 0 : index
    %25 = vector.load %arg1[%c0_21, %c27, %c0_22, %c0_23] : memref<1x36x9x128xf32, #tpu.memory_space<vmem>>, vector<1x8x8x128xf32>
    %26 = vector.shape_cast %25 : vector<1x8x8x128xf32> to vector<64x128xf32>
    %27 = arith.truncf %26 : vector<64x128xf32> to vector<64x128xbf16>
    %c512 = arith.constant 512 : index
    %c0_24 = arith.constant 0 : index
    %28 = vector.load %arg2[%c512, %c0_24] : memref<1152x128xbf16, #tpu.memory_space<vmem>>, vector<128x128xbf16>
    %cst_25 = arith.constant dense<0.000000e+00> : vector<64x128xf32>
    %29 = tpu.matmul %27, %28, %cst_25 {dimension_numbers = #tpu.dot_dimension_numbers<[1], [0], [0], [1], [0, 0, 1, 1], [], []>} : vector<64x128xbf16>, vector<128x128xbf16>, vector<64x128xf32> -> vector<64x128xf32>
    %30 = arith.addf %24, %29 : vector<64x128xf32>
    %c0_26 = arith.constant 0 : index
    %c18_27 = arith.constant 18 : index
    %c1_28 = arith.constant 1 : index
    %c0_29 = arith.constant 0 : index
    %31 = vector.load %arg1[%c0_26, %c18_27, %c1_28, %c0_29] : memref<1x36x9x128xf32, #tpu.memory_space<vmem>>, vector<1x8x8x128xf32>
    %32 = vector.shape_cast %31 : vector<1x8x8x128xf32> to vector<64x128xf32>
    %33 = arith.truncf %32 : vector<64x128xf32> to vector<64x128xbf16>
    %c640 = arith.constant 640 : index
    %c0_30 = arith.constant 0 : index
    %34 = vector.load %arg2[%c640, %c0_30] : memref<1152x128xbf16, #tpu.memory_space<vmem>>, vector<128x128xbf16>
    %cst_31 = arith.constant dense<0.000000e+00> : vector<64x128xf32>
    %35 = tpu.matmul %33, %34, %cst_31 {dimension_numbers = #tpu.dot_dimension_numbers<[1], [0], [0], [1], [0, 0, 1, 1], [], []>} : vector<64x128xbf16>, vector<128x128xbf16>, vector<64x128xf32> -> vector<64x128xf32>
    %36 = arith.addf %30, %35 : vector<64x128xf32>
    %c0_32 = arith.constant 0 : index
    %c1_33 = arith.constant 1 : index
    %c0_34 = arith.constant 0 : index
    %c0_35 = arith.constant 0 : index
    %37 = vector.load %arg1[%c0_32, %c1_33, %c0_34, %c0_35] : memref<1x36x9x128xf32, #tpu.memory_space<vmem>>, vector<1x8x8x128xf32>
    %38 = vector.shape_cast %37 : vector<1x8x8x128xf32> to vector<64x128xf32>
    %39 = arith.truncf %38 : vector<64x128xf32> to vector<64x128xbf16>
    %c768 = arith.constant 768 : index
    %c0_36 = arith.constant 0 : index
    %40 = vector.load %arg2[%c768, %c0_36] : memref<1152x128xbf16, #tpu.memory_space<vmem>>, vector<128x128xbf16>
    %cst_37 = arith.constant dense<0.000000e+00> : vector<64x128xf32>
    %41 = tpu.matmul %39, %40, %cst_37 {dimension_numbers = #tpu.dot_dimension_numbers<[1], [0], [0], [1], [0, 0, 1, 1], [], []>} : vector<64x128xbf16>, vector<128x128xbf16>, vector<64x128xf32> -> vector<64x128xf32>
    %42 = arith.addf %36, %41 : vector<64x128xf32>
    %c0_38 = arith.constant 0 : index
    %c10 = arith.constant 10 : index
    %c0_39 = arith.constant 0 : index
    %c0_40 = arith.constant 0 : index
    %43 = vector.load %arg1[%c0_38, %c10, %c0_39, %c0_40] : memref<1x36x9x128xf32, #tpu.memory_space<vmem>>, vector<1x8x8x128xf32>
    %44 = vector.shape_cast %43 : vector<1x8x8x128xf32> to vector<64x128xf32>
    %45 = arith.truncf %44 : vector<64x128xf32> to vector<64x128xbf16>
    %c896 = arith.constant 896 : index
    %c0_41 = arith.constant 0 : index
    %46 = vector.load %arg2[%c896, %c0_41] : memref<1152x128xbf16, #tpu.memory_space<vmem>>, vector<128x128xbf16>
    %cst_42 = arith.constant dense<0.000000e+00> : vector<64x128xf32>
    %47 = tpu.matmul %45, %46, %cst_42 {dimension_numbers = #tpu.dot_dimension_numbers<[1], [0], [0], [1], [0, 0, 1, 1], [], []>} : vector<64x128xbf16>, vector<128x128xbf16>, vector<64x128xf32> -> vector<64x128xf32>
    %48 = arith.addf %42, %47 : vector<64x128xf32>
    %c0_43 = arith.constant 0 : index
    %c1_44 = arith.constant 1 : index
    %c1_45 = arith.constant 1 : index
    %c0_46 = arith.constant 0 : index
    %49 = vector.load %arg1[%c0_43, %c1_44, %c1_45, %c0_46] : memref<1x36x9x128xf32, #tpu.memory_space<vmem>>, vector<1x8x8x128xf32>
    %50 = vector.shape_cast %49 : vector<1x8x8x128xf32> to vector<64x128xf32>
    %51 = arith.truncf %50 : vector<64x128xf32> to vector<64x128xbf16>
    %c1024 = arith.constant 1024 : index
    %c0_47 = arith.constant 0 : index
    %52 = vector.load %arg2[%c1024, %c0_47] : memref<1152x128xbf16, #tpu.memory_space<vmem>>, vector<128x128xbf16>
    %cst_48 = arith.constant dense<0.000000e+00> : vector<64x128xf32>
    %53 = tpu.matmul %51, %52, %cst_48 {dimension_numbers = #tpu.dot_dimension_numbers<[1], [0], [0], [1], [0, 0, 1, 1], [], []>} : vector<64x128xbf16>, vector<128x128xbf16>, vector<64x128xf32> -> vector<64x128xf32>
    %54 = arith.addf %48, %53 : vector<64x128xf32>
    %55 = vector.shape_cast %54 : vector<64x128xf32> to vector<1x8x8x128xf32>
    %c0_49 = arith.constant 0 : index
    %c0_50 = arith.constant 0 : index
    %c0_51 = arith.constant 0 : index
    %c0_52 = arith.constant 0 : index
    %56 = vector.load %arg4[%c0_49, %c0_50, %c0_51, %c0_52] : memref<1x8x8x128xf32, #tpu.memory_space<vmem>>, vector<1x8x8x128xf32>
    tpu.vector_store %arg4[%c0_49, %c0_50, %c0_51, %c0_52], %55 {strides = array<i32>} : memref<1x8x8x128xf32, #tpu.memory_space<vmem>>, vector<1x8x8x128xf32>,
    %cst_53 = arith.constant dense<0.000000e+00> : vector<128xf32>
    %57 = vector.multi_reduction <add>, %54, %cst_53 [0] : vector<64x128xf32> to vector<128xf32>
    %58 = vector.shape_cast %57 : vector<128xf32> to vector<1x128xf32>
    %c0_54 = arith.constant 0 : index
    %c0_55 = arith.constant 0 : index
    %59 = vector.load %arg5[%c0_54, %c0_55] : memref<8x128xf32, #tpu.memory_space<vmem>>, vector<1x128xf32>
    tpu.vector_store %arg5[%c0_54, %c0_55], %58 {strides = array<i32>} : memref<8x128xf32, #tpu.memory_space<vmem>>, vector<1x128xf32>,
    %60 = arith.mulf %54, %54 : vector<64x128xf32>
    %cst_56 = arith.constant dense<0.000000e+00> : vector<128xf32>
    %61 = vector.multi_reduction <add>, %60, %cst_56 [0] : vector<64x128xf32> to vector<128xf32>
    %62 = vector.shape_cast %61 : vector<128xf32> to vector<1x128xf32>
    %c1_57 = arith.constant 1 : index
    %c0_58 = arith.constant 0 : index
    %63 = vector.load %arg5[%c1_57, %c0_58] : memref<8x128xf32, #tpu.memory_space<vmem>>, vector<1x128xf32>
    tpu.vector_store %arg5[%c1_57, %c0_58], %62 {strides = array<i32>} : memref<8x128xf32, #tpu.memory_space<vmem>>, vector<1x128xf32>,
    %cst_59 = arith.constant 0.000000e+00 : f32
    %64 = vector.broadcast %cst_59 : f32 to vector<6x128xf32>
    %c2 = arith.constant 2 : index
    %c0_60 = arith.constant 0 : index
    %65 = vector.load %arg5[%c2, %c0_60] : memref<8x128xf32, #tpu.memory_space<vmem>>, vector<6x128xf32>
    tpu.vector_store %arg5[%c2, %c0_60], %64 {strides = array<i32>} : memref<8x128xf32, #tpu.memory_space<vmem>>, vector<6x128xf32>,
    %c0_61 = arith.constant 0 : index
    %c27_62 = arith.constant 27 : index
    %c0_63 = arith.constant 0 : index
    %c0_64 = arith.constant 0 : index
    %66 = vector.load %arg1[%c0_61, %c27_62, %c0_63, %c0_64] : memref<1x36x9x128xf32, #tpu.memory_space<vmem>>, vector<1x8x8x128xf32>
    %67 = vector.shape_cast %66 : vector<1x8x8x128xf32> to vector<64x128xf32>
    %68 = arith.truncf %67 : vector<64x128xf32> to vector<64x128xbf16>
    %c0_65 = arith.constant 0 : index
    %c0_66 = arith.constant 0 : index
    %69 = vector.load %arg3[%c0_65, %c0_66] : memref<128x128xbf16, #tpu.memory_space<vmem>>, vector<128x128xbf16>
    %cst_67 = arith.constant dense<0.000000e+00> : vector<64x128xf32>
    %70 = tpu.matmul %68, %69, %cst_67 {dimension_numbers = #tpu.dot_dimension_numbers<[1], [0], [0], [1], [0, 0, 1, 1], [], []>} : vector<64x128xbf16>, vector<128x128xbf16>, vector<64x128xf32> -> vector<64x128xf32>
    %71 = vector.shape_cast %70 : vector<64x128xf32> to vector<1x8x8x128xf32>
    %c0_68 = arith.constant 0 : index
    %c0_69 = arith.constant 0 : index
    %c0_70 = arith.constant 0 : index
    %c0_71 = arith.constant 0 : index
    %72 = vector.load %arg6[%c0_68, %c0_69, %c0_70, %c0_71] : memref<1x8x8x128xf32, #tpu.memory_space<vmem>>, vector<1x8x8x128xf32>
    tpu.vector_store %arg6[%c0_68, %c0_69, %c0_70, %c0_71], %71 {strides = array<i32>} : memref<1x8x8x128xf32, #tpu.memory_space<vmem>>, vector<1x8x8x128xf32>,
    %cst_72 = arith.constant dense<0.000000e+00> : vector<128xf32>
    %73 = vector.multi_reduction <add>, %70, %cst_72 [0] : vector<64x128xf32> to vector<128xf32>
    %74 = vector.shape_cast %73 : vector<128xf32> to vector<1x128xf32>
    %c0_73 = arith.constant 0 : index
    %c0_74 = arith.constant 0 : index
    %75 = vector.load %arg7[%c0_73, %c0_74] : memref<8x128xf32, #tpu.memory_space<vmem>>, vector<1x128xf32>
    tpu.vector_store %arg7[%c0_73, %c0_74], %74 {strides = array<i32>} : memref<8x128xf32, #tpu.memory_space<vmem>>, vector<1x128xf32>,
    %76 = arith.mulf %70, %70 : vector<64x128xf32>
    %cst_75 = arith.constant dense<0.000000e+00> : vector<128xf32>
    %77 = vector.multi_reduction <add>, %76, %cst_75 [0] : vector<64x128xf32> to vector<128xf32>
    %78 = vector.shape_cast %77 : vector<128xf32> to vector<1x128xf32>
    %c1_76 = arith.constant 1 : index
    %c0_77 = arith.constant 0 : index
    %79 = vector.load %arg7[%c1_76, %c0_77] : memref<8x128xf32, #tpu.memory_space<vmem>>, vector<1x128xf32>
    tpu.vector_store %arg7[%c1_76, %c0_77], %78 {strides = array<i32>} : memref<8x128xf32, #tpu.memory_space<vmem>>, vector<1x128xf32>,
    %cst_78 = arith.constant 0.000000e+00 : f32
    %80 = vector.broadcast %cst_78 : f32 to vector<6x128xf32>
    %c2_79 = arith.constant 2 : index
    %c0_80 = arith.constant 0 : index
    %81 = vector.load %arg7[%c2_79, %c0_80] : memref<8x128xf32, #tpu.memory_space<vmem>>, vector<6x128xf32>
    tpu.vector_store %arg7[%c2_79, %c0_80], %80 {strides = array<i32>} : memref<8x128xf32, #tpu.memory_space<vmem>>, vector<6x128xf32>,
    return
  }
  func.func @transform_0(%arg0: i32) -> (i32, i32, i32, i32) {
    %c0_i32 = arith.constant 0 : i32
    %c0_i32_0 = arith.constant 0 : i32
    %c0_i32_1 = arith.constant 0 : i32
    %c0_i32_2 = arith.constant 0 : i32
    return %arg0, %c0_i32, %c0_i32_0, %c0_i32_1 : i32, i32, i32, i32
  }
  func.func @transform_1(%arg0: i32) -> (i32, i32) {
    %c0_i32 = arith.constant 0 : i32
    %c0_i32_0 = arith.constant 0 : i32
    %c0_i32_1 = arith.constant 0 : i32
    return %c0_i32, %c0_i32_0 : i32, i32
  }
  func.func @transform_2(%arg0: i32) -> (i32, i32) {
    %c0_i32 = arith.constant 0 : i32
    %c0_i32_0 = arith.constant 0 : i32
    %c0_i32_1 = arith.constant 0 : i32
    return %c0_i32, %c0_i32_0 : i32, i32
  }
  func.func @transform_3(%arg0: i32) -> (i32, i32, i32, i32) {
    %c0_i32 = arith.constant 0 : i32
    %c0_i32_0 = arith.constant 0 : i32
    %c0_i32_1 = arith.constant 0 : i32
    %c0_i32_2 = arith.constant 0 : i32
    return %arg0, %c0_i32, %c0_i32_0, %c0_i32_1 : i32, i32, i32, i32
  }
  func.func @transform_4(%arg0: i32) -> (i32, i32) {
    %c0_i32 = arith.constant 0 : i32
    %c0_i32_0 = arith.constant 0 : i32
    return %arg0, %c0_i32 : i32, i32
  }
  func.func @transform_5(%arg0: i32) -> (i32, i32, i32, i32) {
    %c0_i32 = arith.constant 0 : i32
    %c0_i32_0 = arith.constant 0 : i32
    %c0_i32_1 = arith.constant 0 : i32
    %c0_i32_2 = arith.constant 0 : i32
    return %arg0, %c0_i32, %c0_i32_0, %c0_i32_1 : i32, i32, i32, i32
  }
  func.func @transform_6(%arg0: i32) -> (i32, i32) {
    %c0_i32 = arith.constant 0 : i32
    %c0_i32_0 = arith.constant 0 : i32
    return %arg0, %c0_i32 : i32, i32
  }
}

</mosaic_0001>

<bundles_post_ra>
// kernel: tpu_custom_call.1
= control target key start
LH: loop header
LB: loop body
LE: loop exit
PB: predicated region body
PF: predicated region fallthrough
CT: control target
= control target key end

     0   :  { %s3654_s0 = inlined_call_operand.vmem [shape: f32[2,36,9,128], index: 0, kind: input, shape index: {}]   ;;  %s3655_s1 = inlined_call_operand.vmem [shape: bf16[1152,128], index: 1, kind: input, shape index: {}]   ;;  %s3656_s2 = inlined_call_operand.vmem [shape: bf16[128,128], index: 2, kind: input, shape index: {}]   ;;  %s3657_s3 = inlined_call_operand.hbm [shape: f32[2,8,8,128], index: 3, kind: output, shape index: {0}]   ;;  %s3658_s4 = inlined_call_operand.hbm [shape: f32[16,128], index: 4, kind: output, shape index: {1}]   ;;  %s3659_s5 = inlined_call_operand.hbm [shape: f32[2,8,8,128], index: 5, kind: output, shape index: {2}]   ;;  %s3660_s6 = inlined_call_operand.hbm [shape: f32[16,128], index: 6, kind: output, shape index: {3}]  }
   0x1   :  { %3665 = sst [smem:[#allocation12_spill]] %s3654_s0 }
   0x2   :  { %3666 = sst [smem:[#allocation13_spill]] %s3655_s1 }
   0x3   :  { %12 = vsyncpa [#allocation3], 0 }
   0x4   :  { %14 = vsyncpa [#allocation3 + $0x1], 0 }
   0x5   :  { %15 = vsyncpa [#allocation5], 0 }
   0x6   :  { %17 = vsyncpa [#allocation5 + $0x1], 0 }
   0x7   :  { %18 = vsyncpa [#allocation8], 0 }
   0x8   :  { %20 = vsyncpa [#allocation8 + $0x1], 0  ;;  %s2993_s21 = smov 0   ;;  %s2995_s22 = smov 0  }
   0x9   :  { %s2997_s23 = smov 0   ;;  %s2999_s24 = smov 0  }
   0xa LB: > { %s3014_s25 = sadd.s32 4294967295, %s2949_s24   ;;  %s3661_s26 = sadd.s32 4294967294, %s2949_s24   ;;  %s2949_s24 = sphi %s2999_s24, %s3679_s24   ;;  %s2945_s23 = sphi %s2997_s23, %s3678_s23   ;;  %s2941_s22 = sphi %s2995_s22, %s3677_s22   ;;  %s2937_s21 = sphi %s2993_s21, %s3676_s21  }
   0xb   : > { %s3018_s27 = sadd.s32 1, %s2949_s24   ;;  %s101_s28 = sadd.s32 1, %s2945_s23 }
   0xc   : > { %s98_s29 = ssub.s32 %s2949_s24, %s3018_s27  ;;  %p111_p0 = scmp.ne.s32.totalorder %s2945_s23, %s2941_s22 }
   0xd   : > { %p99_p1 = scmp.eq.s32.totalorder %s98_s29, 0  ;;  %p112_p2 = scmp.eq.s32.totalorder %s3014_s25, 1 }
   0xe   : > { %p117_p3 = scmp.ne.s32.totalorder %s2941_s22, %s2937_s21  ;;  %p118_p4 = scmp.eq.s32.totalorder %s3661_s26, 1 }
   0xf   : > { %s3031_s30 = scalar_select %p99_p1, %s2945_s23, %s101_s28  }
  0x10   : > { %p3033_p5 = por %p112_p2, %p111_p0  ;;  %p3037_p6 = por %p118_p4, %p117_p3 }
  0x11   : > { %p2069_p7 = scmp.ge.s32.totalorder %s2949_s24, 1  ;;  %p228_p8 = scmp.lt.s32.totalorder %s2949_s24, 3 }
  0x13   : > { %p229_p9 = pnand %p2069_p7, %p228_p8 }
  0x14   : > { %s3669_s1 = sld [smem:[#allocation13_spill]] (!%p229_p9)  ;;  %p273_p10 = scmp.lt.s32.totalorder (!%p229_p9), %s3014_s25, 1 }
  0x15   : > { %232 = sbr.rel (%p229_p9) target bundleno = 506 (0x1fa), region = 32  ;;  %s3670_s0 = sld [smem:[#allocation12_spill]] (!%p229_p9) }
  0x16   : > { %s3447_s16 = sand.u32 (!%p229_p9), 1, %s2941_s22   ;;  %s3662_s9 = sshll.u32 (!%p229_p9), %s3014_s25, 10 }
  0x17   : > { %s2071_s17 = sshll.u32 (!%p229_p9), %s3447_s16, 3  ;;  %s3489_s13 = scalar_lea.hbm (!%p229_p9), %s3657_s3, %s3662_s9 }
  0x18   : > { %s3450_s18 = scalar_lea.vmem (!%p229_p9), [#allocation4], %s2071_s17  ;;  %s3453_s20 = scalar_lea.vmem (!%p229_p9), [#allocation7], %s2071_s17 }
  0x19   : > { %s1841_s14 = scalar_lea.sflag (!%p229_p9), [#allocation3], %s3447_s16  ;;  %s2952_s17 = smov (!%p229_p9), [#allocation2]  }
  0x1a   : > { %v2715_v0 = vld [vmem:[%s3669_s1 + $0x40] sm:$0xff] (!%p229_p9)   ;;  %v2717_v2 = vld [vmem:[%s3669_s1 + $0x48] sm:$0xff] (!%p229_p9)   ;;  %v2719_v4 = vld [vmem:[%s3669_s1 + $0x50] sm:$0xff] (!%p229_p9)  }
  0x1b   : > { %v2716_v1 = vld [vmem:[%s3669_s1 + $0x100] sm:$0xff] (!%p229_p9)   ;;  %2353 = vmatprep.subr.bf16.mxu1 (!%p229_p9), %v2715_v0  ;;  %v2718_v3 = vld [vmem:[%s3669_s1 + $0x108] sm:$0xff] (!%p229_p9)   ;;  %v2720_v5 = vld [vmem:[%s3669_s1 + $0x110] sm:$0xff] (!%p229_p9)  }
  0x1c   : > { %2449 = vmatprep.subr.bf16.mxu0 %v2716_v1  ;;  %2354 = vmatpush3.bf16.msra.mxu1 %v2715_v0  ;;  %s274_s28 = scalar_select %p273_p10, %s3014_s25, 1  ;;  %v2721_v6 = vld [vmem:[%s3669_s1 + $0x58] sm:$0xff]   ;;  %v2723_v8 = vld [vmem:[%s3669_s1 + $0x60] sm:$0xff]   ;;  %v2725_v10 = vld [vmem:[%s3669_s1 + $0x68] sm:$0xff]  }
  0x1d   : > { %2450 = vmatpush3.bf16.msra.mxu0 %v2716_v1  ;;  %2355 = vmatprep.subr.bf16.mxu1 %v2717_v2  ;;  %v2722_v7 = vld [vmem:[%s3669_s1 + $0x118] sm:$0xff]   ;;  %v2724_v9 = vld [vmem:[%s3669_s1 + $0x120] sm:$0xff]   ;;  %v2726_v13 = vld [vmem:[%s3669_s1 + $0x128] sm:$0xff]  }
  0x1e   : > { %2451 = vmatprep.subr.bf16.mxu0 %v2718_v3  ;;  %s2657_s12 = smul.u32 576, %s274_s28  ;;  %v2727_v19 = vld [vmem:[%s3669_s1 + $0x70] sm:$0xff]   ;;  %v2729_v22 = vld [vmem:[%s3669_s1 + $0x78] sm:$0xff]   ;;  %v2731_v24 = vld [vmem:[%s3669_s1] sm:$0xff]  }
  0x1f   : > { %v2728_v21 = vld [vmem:[%s3669_s1 + $0x130] sm:$0xff]   ;;  %v2730_v23 = vld [vmem:[%s3669_s1 + $0x138] sm:$0xff]   ;;  %v2732_v28 = vld [vmem:[%s3669_s1 + $0x140] sm:$0xff]  }
  0x20   : > { %2356 = vmatpush3.bf16.msra.mxu1 %v2717_v2  ;;  %s3078_s19 = scalar_lea.vmem %s3670_s0, %s2657_s12  ;;  %v2733_v34 = vld [vmem:[%s3669_s1 + $0x8] sm:$0xff]   ;;  %v2735_v39 = vld [vmem:[%s3669_s1 + $0x10] sm:$0xff]   ;;  %v2737_v53 = vld [vmem:[%s3669_s1 + $0x18] sm:$0xff]  }
  0x21   : > { %2452 = vmatpush3.bf16.msra.mxu0 %v2718_v3  ;;  %2357 = vmatprep.subr.bf16.mxu1 %v2719_v4  ;;  %v2075_v11 = vld [vmem:[%s3078_s19 + $0x90] sm:$0xff]  ;;  %v3085_v12 = vld [vmem:[%s3078_s19 + $0xa0] sm:$0xff]  ;;  %v2734_v37 = vld [vmem:[%s3669_s1 + $0x148] sm:$0xff]  }
  0x22   : > { %2453 = vmatprep.subr.bf16.mxu0 %v2720_v5  ;;  %v316_v14 = vpack.c.bf16 %v3085_v12, %v2075_v11  ;;  %v2123_v15 = vld [vmem:[%s3078_s19 + $0x1b0] sm:$0xff]  ;;  %v2124_v16 = vld [vmem:[%s3078_s19 + $0x1c0] sm:$0xff]  ;;  %v2738_v54 = vld [vmem:[%s3669_s1 + $0x158] sm:$0xff]  }
  0x23   : > { %v3093_v17 = vpack.c.bf16 %v2124_v16, %v2123_v15  ;;  %v3096_v18 = vld [vmem:[%s3078_s19 + $0xb0] sm:$0xff]  ;;  %v3117_v25 = vld [vmem:[%s3078_s19 + $0xc0] sm:$0xff]  ;;  %v2741_v59 = vld [vmem:[%s3669_s1 + $0x28] sm:$0xff]  }
  0x24   : > { %2358 = vmatpush3.bf16.msra.mxu1 %v2719_v4  ;;  %2369 = vmatprep.mubr.bf16.mxu1 %v316_v14  ;;  %v1319_v20 = vpack.c.bf16 %v3096_v18, %v3085_v12  ;;  %v2125_v26 = vld [vmem:[%s3078_s19 + $0x1d0] sm:$0xff]  ;;  %v2126_v27 = vld [vmem:[%s3078_s19 + $0x1e0] sm:$0xff]  ;;  %v317_v29 = vpack.c.bf16 %v3117_v25, %v3096_v18  ;;  %v2742_v60 = vld [vmem:[%s3669_s1 + $0x168] sm:$0xff]  }
  0x25   : > { %2454 = vmatpush3.bf16.msra.mxu0 %v2720_v5  ;;  %2359 = vmatprep.subr.bf16.mxu1 %v2721_v6  ;;  %v3127_v30 = vld [vmem:[%s3078_s19 + $0xd0] sm:$0xff]  ;;  %v3129_v31 = vpack.c.bf16 %v2126_v27, %v2125_v26  ;;  %v3132_v32 = vld [vmem:[%s3078_s19 + $0xe0] sm:$0xff]  ;;  %v2745_v63 = vld [vmem:[%s3669_s1 + $0x38] sm:$0xff]  }
  0x26   : > { %2455 = vmatprep.subr.bf16.mxu0 %v2722_v7  ;;  %2465 = vmatprep.mubr.bf16.mxu0 %v3093_v17  ;;  %v1320_v33 = vpack.c.bf16 %v3127_v30, %v3117_v25  ;;  %v2127_v35 = vld [vmem:[%s3078_s19 + $0x1f0] sm:$0xff]  ;;  %v2128_v36 = vld [vmem:[%s3078_s19 + $0x200] sm:$0xff]  ;;  %v318_v38 = vpack.c.bf16 %v3132_v32, %v3127_v30  ;;  %v2746_v0 = vld [vmem:[%s3669_s1 + $0x178] sm:$0xff]  }
  0x27   : > { %v3149_v40 = vpack.c.bf16 %v2128_v36, %v2127_v35  ;;  %v3152_v41 = vld [vmem:[%s3078_s19 + $0xf0] sm:$0xff]  ;;  %v3155_v42 = vld [vmem:[%s3078_s19 + $0x100] sm:$0xff]  ;;  %v2750_v15 = vld [vmem:[%s3669_s1 + $0x188] sm:$0xff]  }
  0x28   : > { %2360 = vmatpush3.bf16.msra.mxu1 %v2721_v6  ;;  %v2129_v43 = vld [vmem:[%s3078_s19 + $0x210] sm:$0xff]  ;;  %v1321_v44 = vpack.c.bf16 %v3152_v41, %v3132_v32  ;;  %v2130_v45 = vld [vmem:[%s3078_s19 + $0x220] sm:$0xff]  ;;  %v319_v48 = vpack.c.bf16 %v3155_v42, %v3152_v41  ;;  %v2753_v36 = vld [vmem:[%s3669_s1 + $0x98] sm:$0xff]  }
  0x29   : > { %2456 = vmatpush3.bf16.msra.mxu0 %v2722_v7  ;;  %2361 = vmatprep.subr.bf16.mxu1 %v2723_v8  ;;  %v2736_v46 = vld [vmem:[%s3669_s1 + $0x150] sm:$0xff]   ;;  %v279_v47 = vld [vmem:[%s3078_s19] sm:$0xff]  ;;  %v3172_v50 = vpack.c.bf16 %v2130_v45, %v2129_v43  ;;  %v2786_v30 = vld [vmem:[%s3656_s2 + $0x18] sm:$0xff]  }
  0x2a   : > { %2457 = vmatprep.subr.bf16.mxu0 %v2724_v9  ;;  %v3170_v49 = vld [vmem:[%s3078_s19 + $0x10] sm:$0xff]  ;;  %v2139_v51 = vld [vmem:[%s3078_s19 + $0x121] sm:$0xff] }
  0x2b   : > { %v2140_v52 = vld [vmem:[%s3078_s19 + $0x131] sm:$0xff]  ;;  %v287_v55 = vpack.c.bf16 %v3170_v49, %v279_v47  ;;  %v2739_v57 = vld [vmem:[%s3669_s1 + $0x20] sm:$0xff]   ;;  %v2758_v47 = vld [vmem:[%s3669_s1 + $0x1a8] sm:$0xff]  }
  0x2c   : > { %2362 = vmatpush3.bf16.msra.mxu1 %v2723_v8  ;;  %v1019_v56 = vpack.c.bf16 %v2140_v52, %v2139_v51  ;;  %v2740_v58 = vld [vmem:[%s3669_s1 + $0x160] sm:$0xff]   ;;  %v2743_v61 = vld [vmem:[%s3669_s1 + $0x30] sm:$0xff]   ;;  %v2761_v51 = vld [vmem:[%s3669_s1 + $0xb8] sm:$0xff]  }
  0x2d   : > { %2458 = vmatpush3.bf16.msra.mxu0 %v2724_v9  ;;  %2363 = vmatprep.subr.bf16.mxu1 %v2725_v10  ;;  %v2744_v62 = vld [vmem:[%s3669_s1 + $0x170] sm:$0xff]   ;;  %v2747_v1 = vld [vmem:[%s3669_s1 + $0x80] sm:$0xff]   ;;  %v2762_v52 = vld [vmem:[%s3669_s1 + $0x1b8] sm:$0xff]  }
  0x2e   : > { %2459 = vmatprep.subr.bf16.mxu0 %v2726_v13  ;;  %v281_v2 = vld [vmem:[%s3078_s19 + $0x20] sm:$0xff]  ;;  %v3213_v3 = vld [vmem:[%s3078_s19 + $0x30] sm:$0xff] }
  0x2f   : > { %v2141_v4 = vld [vmem:[%s3078_s19 + $0x141] sm:$0xff]  ;;  %v2142_v5 = vld [vmem:[%s3078_s19 + $0x151] sm:$0xff]  ;;  %v288_v9 = vpack.c.bf16 %v3213_v3, %v281_v2 }
  0x30   : > { %2364 = vmatpush3.bf16.msra.mxu1 %v2725_v10  ;;  %v2748_v6 = vld [vmem:[%s3669_s1 + $0x180] sm:$0xff]   ;;  %v3224_v8 = vld [vmem:[%s3078_s19 + $0x50] sm:$0xff]  ;;  %v2749_v10 = vld [vmem:[%s3669_s1 + $0x88] sm:$0xff]  }
  0x31   : > { %2460 = vmatpush3.bf16.msra.mxu0 %v2726_v13  ;;  %2365 = vmatprep.subr.bf16.mxu1 %v2727_v19  ;;  %v3221_v7 = vld [vmem:[%s3078_s19 + $0x40] sm:$0xff]  ;;  %v1020_v13 = vpack.c.bf16 %v2142_v5, %v2141_v4  ;;  %v2144_v14 = vld [vmem:[%s3078_s19 + $0x171] sm:$0xff] }
  0x32   : > { %2461 = vmatprep.subr.bf16.mxu0 %v2728_v21  ;;  %v2143_v11 = vld [vmem:[%s3078_s19 + $0x161] sm:$0xff]  ;;  %v289_v16 = vpack.c.bf16 %v3224_v8, %v3221_v7  ;;  %v2146_v27 = vld [vmem:[%s3078_s19 + $0x191] sm:$0xff] }
  0x33   : > { %v2145_v26 = vld [vmem:[%s3078_s19 + $0x181] sm:$0xff]  ;;  %v2768_v5 = vld [vmem:[%s3669_s1 + $0x1d0] sm:$0xff]  }
  0x34   : > { %2366 = vmatpush3.bf16.msra.mxu1 %v2727_v19  ;;  %v3238_v19 = vld [vmem:[%s3078_s19 + $0x60] sm:$0xff]  ;;  %v1022_v35 = vpack.c.bf16 %v2146_v27, %v2145_v26  ;;  %v2775_v12 = vld [vmem:[%s3669_s1 + $0xf0] sm:$0xff]  }
  0x35   : > { %2462 = vmatpush3.bf16.msra.mxu0 %v2728_v21  ;;  %2367 = vmatprep.subr.bf16.mxu1 %v2729_v22  ;;  %v2751_v21 = vld [vmem:[%s3669_s1 + $0x90] sm:$0xff]   ;;  %v2755_v43 = vld [vmem:[%s3669_s1 + $0xa0] sm:$0xff]  }
  0x36   : > { %2463 = vmatprep.subr.bf16.mxu0 %v2730_v23  ;;  %v2756_v45 = vld [vmem:[%s3669_s1 + $0x1a0] sm:$0xff]   ;;  %v2776_v18 = vld [vmem:[%s3669_s1 + $0x1f0] sm:$0xff]  }
  0x37   : > { %v2162_v4 = vld [vmem:[%s3078_s19 + $0x80] sm:$0xff] }
  0x38   : > { %2368 = vmatpush3.bf16.msra.mxu1 %v2729_v22  ;;  %v1021_v22 = vpack.c.bf16 %v2144_v14, %v2143_v11  ;;  %v2770_v11 = vld [vmem:[%s3669_s1 + $0x1d8] sm:$0xff]   ;;  %v2771_v14 = vld [vmem:[%s3669_s1 + $0xe0] sm:$0xff]  }
  0x39   : > { %2464 = vmatpush3.bf16.msra.mxu0 %v2730_v23  ;;  %2377 = vmatprep.subr.bf16.mxu1 %v2731_v24  ;;  %v3244_v23 = vld [vmem:[%s3078_s19 + $0x70] sm:$0xff]  ;;  %v2779_v26 = vld [vmem:[%s3669_s1 + $0x200] sm:$0xff]  }
  0x3a   : > { %2473 = vmatprep.subr.bf16.mxu0 %v2732_v28  ;;  %v2788_v32 = vld [vmem:[%s3656_s2 + $0x20] sm:$0xff]  }
  0x3b   : > { %2370 = vmatmul.mubr.bf16.vlgmr.msra.gmra.mrb[0].mxu1 %v317_v29  ;;  %v290_v29 = vpack.c.bf16 %v3244_v23, %v3238_v19  ;;  %v2787_v41 = vld [vmem:[%s3669_s1 + $0x220] sm:$0xff]  }
  0x3c   : > { %2378 = vmatpush3.bf16.msra.mxu1 %v2731_v24  ;;  %2466 = vmatmul.mubr.bf16.vlgmr.msra.gmra.mrb[0].mxu0 %v3129_v31  ;;  %v2752_v24 = vld [vmem:[%s3669_s1 + $0x190] sm:$0xff]  }
  0x3d   : > { %2474 = vmatpush3.bf16.msra.mxu0 %v2732_v28  ;;  %2379 = vmatprep.subr.bf16.mxu1 %v2733_v34  ;;  %v562_v28 = vld [vmem:[%s3078_s19 + $0x1] sm:$0xff] }
  0x3e   : > { %2475 = vmatprep.subr.bf16.mxu0 %v2734_v37  ;;  %2373 = vmatprep.mubr.bf16.mxu1 %v318_v38 }
  0x3f   : > { %2469 = vmatprep.mubr.bf16.mxu0 %v3149_v40 }
  0x40   : > { %2380 = vmatpush3.bf16.msra.mxu1 %v2733_v34  ;;  %v3255_v34 = vld [vmem:[%s3078_s19 + $0x11] sm:$0xff] }
  0x41   : > { %2476 = vmatpush3.bf16.msra.mxu0 %v2734_v37  ;;  %2381 = vmatprep.subr.bf16.mxu1 %v2735_v39  ;;  %v2754_v37 = vld [vmem:[%s3669_s1 + $0x198] sm:$0xff]   ;;  %v570_v38 = vpack.c.bf16 %v3255_v34, %v562_v28  ;;  %v2111_v28 = vld [vmem:[%s3078_s19 + $0x160] sm:$0xff] }
  0x42   : > { %2477 = vmatprep.subr.bf16.mxu0 %v2736_v46 }
  0x43   : > { %2374 = vmatmul.mubr.bf16.gmra.mrb[4].mxu1 %v319_v48  ;;  %v2759_v48 = vld [vmem:[%s3669_s1 + $0xb0] sm:$0xff]  }
  0x44   : > { %2382 = vmatpush3.bf16.msra.mxu1 %v2735_v39  ;;  %2470 = vmatmul.mubr.bf16.gmra.mrb[4].mxu0 %v3172_v50  ;;  %v1169_v39 = vpack.c.bf16 %v281_v2, %v3170_v49  ;;  %v2760_v49 = vld [vmem:[%s3669_s1 + $0x1b0] sm:$0xff]  }
  0x45   : > { %2478 = vmatpush3.bf16.msra.mxu0 %v2736_v46  ;;  %2383 = vmatprep.subr.bf16.mxu1 %v2737_v53  ;;  %v2757_v46 = vld [vmem:[%s3669_s1 + $0xa8] sm:$0xff]   ;;  %v3325_v2 = vld [vmem:[%s3078_s19 + $0x71] sm:$0xff] }
  0x46   : > { %2479 = vmatprep.subr.bf16.mxu0 %v2738_v54  ;;  %2393 = vmatprep.mubr.bf16.mxu1 %v287_v55  ;;  %v2763_v55 = vld [vmem:[%s3669_s1 + $0xc0] sm:$0xff]  }
  0x47   : > { %2489 = vmatprep.mubr.bf16.mxu0 %v1019_v56  ;;  %v2764_v56 = vld [vmem:[%s3669_s1 + $0x1c0] sm:$0xff]  }
  0x48   : > { %2384 = vmatpush3.bf16.msra.mxu1 %v2737_v53  ;;  %v3290_v53 = vld [vmem:[%s3078_s19 + $0x21] sm:$0xff] }
  0x49   : > { %2480 = vmatpush3.bf16.msra.mxu0 %v2738_v54  ;;  %2385 = vmatprep.subr.bf16.mxu1 %v2739_v57  ;;  %v3293_v54 = vld [vmem:[%s3078_s19 + $0x31] sm:$0xff] }
  0x4a   : > { %2481 = vmatprep.subr.bf16.mxu0 %v2740_v58 }
  0x4c   : > { %2386 = vmatpush3.bf16.msra.mxu1 %v2739_v57  ;;  %v3302_v57 = vld [vmem:[%s3078_s19 + $0x41] sm:$0xff] }
  0x4d   : > { %2482 = vmatpush3.bf16.msra.mxu0 %v2740_v58  ;;  %2387 = vmatprep.subr.bf16.mxu1 %v2741_v59  ;;  %v571_v58 = vpack.c.bf16 %v3293_v54, %v3290_v53 }
  0x4e   : > { %2483 = vmatprep.subr.bf16.mxu0 %v2742_v60 }
  0x50   : > { %2388 = vmatpush3.bf16.msra.mxu1 %v2741_v59  ;;  %v3307_v59 = vld [vmem:[%s3078_s19 + $0x51] sm:$0xff] }
  0x51   : > { %2484 = vmatpush3.bf16.msra.mxu0 %v2742_v60  ;;  %2389 = vmatprep.subr.bf16.mxu1 %v2743_v61  ;;  %v1170_v60 = vpack.c.bf16 %v3221_v7, %v3213_v3  ;;  %v2767_v3 = vld [vmem:[%s3669_s1 + $0xd0] sm:$0xff]   ;;  %v2107_v7 = vld [vmem:[%s3078_s19 + $0x120] sm:$0xff] }
  0x52   : > { %2485 = vmatprep.subr.bf16.mxu0 %v2744_v62 }
  0x54   : > { %2390 = vmatpush3.bf16.msra.mxu1 %v2743_v61  ;;  %v2765_v61 = vld [vmem:[%s3669_s1 + $0xc8] sm:$0xff]  }
  0x55   : > { %2486 = vmatpush3.bf16.msra.mxu0 %v2744_v62  ;;  %2391 = vmatprep.subr.bf16.mxu1 %v2745_v63  ;;  %v2766_v62 = vld [vmem:[%s3669_s1 + $0x1c8] sm:$0xff]  }
  0x56   : > { %2487 = vmatprep.subr.bf16.mxu0 %v2746_v0 }
  0x58   : > { %2392 = vmatpush3.bf16.msra.mxu1 %v2745_v63  ;;  %v572_v63 = vpack.c.bf16 %v3307_v59, %v3302_v57 }
  0x59   : > { %2488 = vmatpush3.bf16.msra.mxu0 %v2746_v0  ;;  %2401 = vmatprep.subr.bf16.mxu1 %v2747_v1  ;;  %v1171_v0 = vpack.c.bf16 %v3238_v19, %v3224_v8  ;;  %v2108_v8 = vld [vmem:[%s3078_s19 + $0x130] sm:$0xff]  ;;  %v2774_v19 = vld [vmem:[%s3669_s1 + $0x1e8] sm:$0xff]  }
  0x5a   : > { %2497 = vmatprep.subr.bf16.mxu0 %v2748_v6 }
  0x5b   : > { %2394 = vmatmul.mubr.bf16.vlgmr.msra.gmra.mrb[0].mxu1 %v288_v9  ;;  %v1172_v9 = vpack.c.bf16 %v2162_v4, %v3244_v23  ;;  %v2110_v23 = vld [vmem:[%s3078_s19 + $0x150] sm:$0xff] }
  0x5c   : > { %2402 = vmatpush3.bf16.msra.mxu1 %v2747_v1  ;;  %2490 = vmatmul.mubr.bf16.vlgmr.msra.gmra.mrb[0].mxu0 %v1020_v13  ;;  %v3322_v1 = vld [vmem:[%s3078_s19 + $0x61] sm:$0xff]  ;;  %v720_v13 = vpack.c.bf16 %v2108_v8, %v2107_v7 }
  0x5d   : > { %2498 = vmatpush3.bf16.msra.mxu0 %v2748_v6  ;;  %2403 = vmatprep.subr.bf16.mxu1 %v2749_v10  ;;  %v573_v6 = vpack.c.bf16 %v3325_v2, %v3322_v1 }
  0x5e   : > { %2499 = vmatprep.subr.bf16.mxu0 %v2750_v15  ;;  %2397 = vmatprep.mubr.bf16.mxu1 %v289_v16  ;;  %v2773_v16 = vld [vmem:[%s3669_s1 + $0xe8] sm:$0xff]  }
  0x5f   : > { %2493 = vmatprep.mubr.bf16.mxu0 %v1021_v22  ;;  %v2109_v22 = vld [vmem:[%s3078_s19 + $0x140] sm:$0xff] }
  0x60   : > { %2404 = vmatpush3.bf16.msra.mxu1 %v2749_v10  ;;  %v2769_v10 = vld [vmem:[%s3669_s1 + $0xd8] sm:$0xff]   ;;  %v721_v27 = vpack.c.bf16 %v2110_v23, %v2109_v22 }
  0x61   : > { %2500 = vmatpush3.bf16.msra.mxu0 %v2750_v15  ;;  %2405 = vmatprep.subr.bf16.mxu1 %v2751_v21  ;;  %v2772_v15 = vld [vmem:[%s3669_s1 + $0x1e0] sm:$0xff]  }
  0x62   : > { %2501 = vmatprep.subr.bf16.mxu0 %v2752_v24 }
  0x63   : > { %2398 = vmatmul.mubr.bf16.gmra.mrb[4].mxu1 %v290_v29  ;;  %v2112_v29 = vld [vmem:[%s3078_s19 + $0x170] sm:$0xff] }
  0x64   : > { %2406 = vmatpush3.bf16.msra.mxu1 %v2751_v21  ;;  %2494 = vmatmul.mubr.bf16.gmra.mrb[4].mxu0 %v1022_v35  ;;  %v2778_v21 = vld [vmem:[%s3669_s1 + $0x1f8] sm:$0xff]   ;;  %v2782_v35 = vld [vmem:[%s3656_s2 + $0x8] sm:$0xff]  }
  0x65   : > { %2502 = vmatpush3.bf16.msra.mxu0 %v2752_v24  ;;  %2407 = vmatprep.subr.bf16.mxu1 %v2753_v36  ;;  %v2780_v24 = vld [vmem:[%s3656_s2] sm:$0xff]  }
  0x66   : > { %2503 = vmatprep.subr.bf16.mxu0 %v2754_v37  ;;  %2417 = vmatprep.mubr.bf16.mxu1 %v570_v38  ;;  %v2113_v38 = vld [vmem:[%s3078_s19 + $0x180] sm:$0xff] }
  0x67   : > { %2513 = vmatprep.mubr.bf16.mxu0 %v1169_v39  ;;  %v2114_v39 = vld [vmem:[%s3078_s19 + $0x190] sm:$0xff] }
  0x68   : > { %2408 = vmatpush3.bf16.msra.mxu1 %v2753_v36  ;;  %v2781_v36 = vld [vmem:[%s3669_s1 + $0x208] sm:$0xff]  }
  0x69   : > { %2504 = vmatpush3.bf16.msra.mxu0 %v2754_v37  ;;  %2409 = vmatprep.subr.bf16.mxu1 %v2755_v43  ;;  %v722_v37 = vpack.c.bf16 %v2112_v29, %v2111_v28 }
  0x6a   : > { %2505 = vmatprep.subr.bf16.mxu0 %v2756_v45 }
  0x6c   : > { %2410 = vmatpush3.bf16.msra.mxu1 %v2755_v43  ;;  %v2784_v43 = vld [vmem:[%s3656_s2 + $0x10] sm:$0xff]  }
  0x6d   : > { %2506 = vmatpush3.bf16.msra.mxu0 %v2756_v45  ;;  %2411 = vmatprep.subr.bf16.mxu1 %v2757_v46  ;;  %v2178_v45 = vld [vmem:[%s3078_s19 + $0x110] sm:$0xff] }
  0x6e   : > { %2507 = vmatprep.subr.bf16.mxu0 %v2758_v47  ;;  %v1322_v25 = vpack.c.bf16 %v2178_v45, %v3155_v42  ;;  %v2790_v42 = vld [vmem:[%s3656_s2 + $0x28] sm:$0xff]  }
  0x70   : > { %2412 = vmatpush3.bf16.msra.mxu1 %v2757_v46  ;;  %v2783_v46 = vld [vmem:[%s3669_s1 + $0x210] sm:$0xff]  }
  0x71   : > { %2508 = vmatpush3.bf16.msra.mxu0 %v2758_v47  ;;  %2413 = vmatprep.subr.bf16.mxu1 %v2759_v48  ;;  %v723_v47 = vpack.c.bf16 %v2114_v39, %v2113_v38 }
  0x72   : > { %2509 = vmatprep.subr.bf16.mxu0 %v2760_v49 }
  0x74   : > { %2414 = vmatpush3.bf16.msra.mxu1 %v2759_v48  ;;  %v1468_v48 = vpack.c.bf16 %v3290_v53, %v3255_v34  ;;  %v2792_v34 = vld [vmem:[%s3656_s2 + $0x30] sm:$0xff]   ;;  %v1470_v53 = vpack.c.bf16 %v3322_v1, %v3307_v59 }
  0x75   : > { %2510 = vmatpush3.bf16.msra.mxu0 %v2760_v49  ;;  %2415 = vmatprep.subr.bf16.mxu1 %v2761_v51  ;;  %v2794_v49 = vld [vmem:[%s3656_s2 + $0x38] sm:$0xff]  }
  0x76   : > { %2511 = vmatprep.subr.bf16.mxu0 %v2762_v52 }
  0x78   : > { %2416 = vmatpush3.bf16.msra.mxu1 %v2761_v51  ;;  %v2793_v51 = vld [vmem:[%s3669_s1 + $0x238] sm:$0xff]  }
  0x79   : > { %2512 = vmatpush3.bf16.msra.mxu0 %v2762_v52  ;;  %2425 = vmatprep.subr.bf16.mxu1 %v2763_v55  ;;  %v1469_v52 = vpack.c.bf16 %v3302_v57, %v3293_v54  ;;  %v2951_v54 = vmov 0.0  }
  0x7a   : > { %2521 = vmatprep.subr.bf16.mxu0 %v2764_v56  ;;  %1653 = vst [vmem:[%s3450_s18 + $0x2] sm:$0x3f] %v2951_v54  ;;  %1839 = vst [vmem:[%s3453_s20 + $0x2] sm:$0x3f] %v2951_v54 }
  0x7b   : > { %2418 = vmatmul.mubr.bf16.vlgmr.msra.gmra.mrb[0].mxu1 %v571_v58 }
  0x7c   : > { %2426 = vmatpush3.bf16.msra.mxu1 %v2763_v55  ;;  %2514 = vmatmul.mubr.bf16.vlgmr.msra.gmra.mrb[0].mxu0 %v1170_v60  ;;  %v2194_v55 = vld [vmem:[%s3078_s19 + $0x81] sm:$0xff]  ;;  %s2070_s19 = sshll.u32 %s3447_s16, 6 }
  0x7d   : > { %2522 = vmatpush3.bf16.msra.mxu0 %v2764_v56  ;;  %2427 = vmatprep.subr.bf16.mxu1 %v2765_v61  ;;  %v1471_v56 = vpack.c.bf16 %v2194_v55, %v3325_v2  ;;  %s3459_s28 = scalar_lea.vmem [#allocation6], %s2070_s19  ;;  %s3464_s29 = scalar_lea.vmem [#allocation2], %s2070_s19 }
  0x7e   : > { %2523 = vmatprep.subr.bf16.mxu0 %v2766_v62  ;;  %2421 = vmatprep.mubr.bf16.mxu1 %v572_v63  ;;  %s1869_s10 = sshll.u32 %s3464_s29, 4  ;;  %s2799_s19 = sshll.u32 %s2952_s17, 4  ;;  %s3493_s10 = int_to_ptr.vmem [resolvable:$true] %s1869_s10  ;;  %s2800_s19 = int_to_ptr.vmem [resolvable:$false] %s2799_s19 }
  0x7f   : > { %2517 = vmatprep.mubr.bf16.mxu0 %v1171_v0  ;;  %s2795_s15 = scalar_lea.vmem %s3493_s10, 1024  ;;  %s2801_s11 = scalar_lea.vmem %s2800_s19, 2048 }
  0x80   : > { %2428 = vmatpush3.bf16.msra.mxu1 %v2765_v61  ;;  %p2796_p11 = scmp.ne.s32.totalorder %s3493_s10, %s2795_s15  ;;  %p2802_p0 = scmp.lt.s32.totalorder %s3493_s10, %s2800_s19 }
  0x81   : > { %2524 = vmatpush3.bf16.msra.mxu0 %v2766_v62  ;;  %2429 = vmatprep.subr.bf16.mxu1 %v2767_v3  ;;  %p2803_p1 = scmp.lt.s32.totalorder %s2801_s11, %s2795_s15 }
  0x82   : > { %2525 = vmatprep.subr.bf16.mxu0 %v2768_v5  ;;  %p2797_p12 = pnand %p2796_p11, %p3033_p5 }
  0x83   : > { %2422 = vmatmul.mubr.bf16.gmra.mrb[4].mxu1 %v573_v6  ;;  %p2804_p2 = por %p2803_p1, %p2802_p0 }
  0x84   : > { %2430 = vmatpush3.bf16.msra.mxu1 %v2767_v3  ;;  %2518 = vmatmul.mubr.bf16.gmra.mrb[4].mxu0 %v1172_v9  ;;  %p2798_p13 = pneg %p2797_p12 }
  0x85   : > { %2526 = vmatpush3.bf16.msra.mxu0 %v2768_v5  ;;  %2431 = vmatprep.subr.bf16.mxu1 %v2769_v10 }
  0x86   : > { %2527 = vmatprep.subr.bf16.mxu0 %v2770_v11  ;;  %2441 = vmatprep.mubr.bf16.mxu1 %v720_v13  ;;  %p2805_p3 = pnand %p2804_p2, %p2798_p13 }
  0x87   : > { %2537 = vmatprep.mubr.bf16.mxu0 %v1319_v20  ;;  %v2777_v20 = vld [vmem:[%s3669_s1 + $0xf8] sm:$0xff]  }
  0x88   : > { %2432 = vmatpush3.bf16.msra.mxu1 %v2769_v10 }
  0x89   : > { %2528 = vmatpush3.bf16.msra.mxu0 %v2770_v11  ;;  %2433 = vmatprep.subr.bf16.mxu1 %v2771_v14 }
  0x8a   : > { %2529 = vmatprep.subr.bf16.mxu0 %v2772_v15 }
  0x8c   : > { %2434 = vmatpush3.bf16.msra.mxu1 %v2771_v14 }
  0x8d   : > { %2530 = vmatpush3.bf16.msra.mxu0 %v2772_v15  ;;  %2435 = vmatprep.subr.bf16.mxu1 %v2773_v16 }
  0x8e   : > { %2531 = vmatprep.subr.bf16.mxu0 %v2774_v19 }
  0x90   : > { %2436 = vmatpush3.bf16.msra.mxu1 %v2773_v16 }
  0x91   : > { %2532 = vmatpush3.bf16.msra.mxu0 %v2774_v19  ;;  %2437 = vmatprep.subr.bf16.mxu1 %v2775_v12 }
  0x92   : > { %2533 = vmatprep.subr.bf16.mxu0 %v2776_v18 }
  0x94   : > { %2438 = vmatpush3.bf16.msra.mxu1 %v2775_v12 }
  0x95   : > { %2534 = vmatpush3.bf16.msra.mxu0 %v2776_v18  ;;  %2439 = vmatprep.subr.bf16.mxu1 %v2777_v20 }
  0x96   : > { %2535 = vmatprep.subr.bf16.mxu0 %v2778_v21 }
  0x98   : > { %2440 = vmatpush3.bf16.msra.mxu1 %v2777_v20 }
  0x99   : > { %2536 = vmatpush3.bf16.msra.mxu0 %v2778_v21  ;;  %2569 = vmatprep.subr.bf16.mxu1 %v2780_v24 }
  0x9a   : > { %2545 = vmatprep.subr.bf16.mxu0 %v2779_v26 }
  0x9b   : > { %2442 = vmatmul.mubr.bf16.vlgmr.msra.gmra.mrb[0].mxu1 %v721_v27 }
  0x9c   : > { %2538 = vmatmul.mubr.bf16.vlgmr.msra.gmra.mrb[0].mxu0 %v1320_v33  ;;  %2570 = vmatpush3.bf16.msra.mxu1 %v2780_v24  ;;  %v2785_v33 = vld [vmem:[%s3669_s1 + $0x218] sm:$0xff]  }
  0x9d   : > { %2546 = vmatpush3.bf16.msra.mxu0 %v2779_v26  ;;  %2571 = vmatprep.subr.bf16.mxu1 %v2782_v35 }
  0x9e   : > { %2547 = vmatprep.subr.bf16.mxu0 %v2781_v36  ;;  %2445 = vmatprep.mubr.bf16.mxu1 %v722_v37 }
  0x9f   : > { %2541 = vmatprep.mubr.bf16.mxu0 %v1321_v44  ;;  %v2789_v44 = vld [vmem:[%s3669_s1 + $0x228] sm:$0xff]  }
  0xa0   : > { %2572 = vmatpush3.bf16.msra.mxu1 %v2782_v35 }
  0xa1   : > { %2548 = vmatpush3.bf16.msra.mxu0 %v2781_v36  ;;  %2573 = vmatprep.subr.bf16.mxu1 %v2784_v43 }
  0xa2   : > { %2549 = vmatprep.subr.bf16.mxu0 %v2783_v46 }
  0xa3   : > { %2446 = vmatmul.mubr.bf16.gmra.mrb[4].mxu1 %v723_v47 }
  0xa4   : > { %2574 = vmatpush3.bf16.msra.mxu1 %v2784_v43  ;;  %2542 = vmatmul.mubr.bf16.gmra.mrb[4].mxu0 %v1322_v25 }
  0xa5   : > { %2550 = vmatpush3.bf16.msra.mxu0 %v2783_v46  ;;  %2575 = vmatprep.subr.bf16.mxu1 %v2786_v30 }
  0xa6   : > { %2551 = vmatprep.subr.bf16.mxu0 %v2785_v33  ;;  %2561 = vmatprep.mubr.bf16.mxu0 %v1468_v48 }
  0xa7   : > { %2585 = vmatprep.mubr.bf16.mxu1 %v3093_v17  ;;  %v2791_v17 = vld [vmem:[%s3669_s1 + $0x230] sm:$0xff]  }
  0xa8   : > { %2576 = vmatpush3.bf16.msra.mxu1 %v2786_v30 }
  0xa9   : > { %2552 = vmatpush3.bf16.msra.mxu0 %v2785_v33  ;;  %2577 = vmatprep.subr.bf16.mxu1 %v2788_v32 }
  0xaa   : > { %2553 = vmatprep.subr.bf16.mxu0 %v2787_v41 }
  0xac   : > { %2578 = vmatpush3.bf16.msra.mxu1 %v2788_v32 }
  0xad   : > { %2554 = vmatpush3.bf16.msra.mxu0 %v2787_v41  ;;  %2579 = vmatprep.subr.bf16.mxu1 %v2790_v42 }
  0xae   : > { %2555 = vmatprep.subr.bf16.mxu0 %v2789_v44 }
  0xb0   : > { %2580 = vmatpush3.bf16.msra.mxu1 %v2790_v42 }
  0xb1   : > { %2556 = vmatpush3.bf16.msra.mxu0 %v2789_v44  ;;  %2581 = vmatprep.subr.bf16.mxu1 %v2792_v34 }
  0xb2   : > { %2557 = vmatprep.subr.bf16.mxu0 %v2791_v17 }
  0xb4   : > { %2582 = vmatpush3.bf16.msra.mxu1 %v2792_v34 }
  0xb5   : > { %2558 = vmatpush3.bf16.msra.mxu0 %v2791_v17  ;;  %2583 = vmatprep.subr.bf16.mxu1 %v2794_v49 }
  0xb6   : > { %2559 = vmatprep.subr.bf16.mxu0 %v2793_v51 }
  0xb8   : > { %2584 = vmatpush3.bf16.msra.mxu1 %v2794_v49 }
  0xb9   : > { %2560 = vmatpush3.bf16.msra.mxu0 %v2793_v51 }
  0xbb   : > { %2586 = vmatmul.mubr.bf16.vlgmr.msra.gmra.mrb[8].mxu1 %v3129_v31 }
  0xbc   : > { %2562 = vmatmul.mubr.bf16.vlgmr.msra.gmra.mrb[0].mxu0 %v1469_v52  ;;  %2589 = vmatprep.mubr.bf16.mxu1 %v3149_v40 }
  0xbd   : > { %2565 = vmatprep.mubr.bf16.mxu0 %v1470_v53 }
  0xc3   : > { %2590 = vmatmul.mubr.bf16.gmra.mrb[12].mxu1 %v3172_v50 }
  0xc4   : > { %2566 = vmatmul.mubr.bf16.gmra.mrb[4].mxu0 %v1471_v56 }
 0x16e   : > { %v2443_v31 = vpop.f32.mrb[0].mxu1 }
 0x16f   : > { %v822_v40 = vpop.f32.mrb[1].mxu1 }
 0x170   : > { %v2444_v57 = vpop.f32.mrb[2].mxu1 }
 0x171   : > { %v825_v58 = vpop.f32.mrb[3].mxu1 }
 0x176   : > { %v2447_v50 = vpop.f32.mrb[4].mxu1 }
 0x177   : > { %v838_v59 = vpop.f32.mrb[5].mxu1 }
 0x178   : > { %v2448_v60 = vpop.f32.mrb[6].mxu1 }
 0x179   : > { %v3456_v61 = vpop.f32.mrb[7].mxu1 }
 0x18e   : > { %v2587_v62 = vpop.f32.mrb[8].mxu1 }
 0x18f   : > { %v2563_v63 = vpop.f32.mrb[0].mxu0  ;;  %1797 = vst [vmem:[%s3459_s28 + $0x10] sm:$0xff] %v2587_v62  ;;  %v1764_v0 = vpop.f32.mrb[9].mxu1  ;;  %v1819_v14 = vmul.f32 %v2587_v62, %v2587_v62 }
 0x190   : > { %v2593_v1 = vadd.f32 %v2563_v63, %v2443_v31  ;;  %v1570_v2 = vpop.f32.mrb[1].mxu0  ;;  %1795 = vst [vmem:[%s3459_s28] sm:$0xff] %v1764_v0  ;;  %v1817_v3 = vmul.f32 %v1764_v0, %v1764_v0  ;;  %v2588_v4 = vpop.f32.mrb[10].mxu1 }
 0x191   : > { %v2594_v5 = vadd.f32 %v1570_v2, %v822_v40  ;;  %v2564_v6 = vpop.f32.mrb[2].mxu0  ;;  %1798 = vst [vmem:[%s3459_s28 + $0x18] sm:$0xff] %v2588_v4  ;;  %v1767_v7 = vpop.f32.mrb[11].mxu1  ;;  %v1820_v20 = vmul.f32 %v2588_v4, %v2588_v4 }
 0x192   : > { %1611 = vst [vmem:[%s3464_s29 + $0x10] sm:$0xff] %v2593_v1  ;;  %v2595_v8 = vadd.f32 %v2564_v6, %v2444_v57  ;;  %v1573_v9 = vpop.f32.mrb[3].mxu0  ;;  %1796 = vst [vmem:[%s3459_s28 + $0x8] sm:$0xff] %v1767_v7  ;;  %v1803_v10 = vadd.f32 %v1767_v7, %v1764_v0  ;;  %v1818_v11 = vmul.f32 %v1767_v7, %v1767_v7 }
 0x193   : > { %1609 = vst [vmem:[%s3464_s29] sm:$0xff] %v2594_v5  ;;  %v2596_v13 = vadd.f32 %v1573_v9, %v825_v58  ;;  %v1631_v19 = vmul.f32 %v2594_v5, %v2594_v5  ;;  %v1633_v24 = vmul.f32 %v2593_v1, %v2593_v1 }
 0x194   : > { %1612 = vst [vmem:[%s3464_s29 + $0x18] sm:$0xff] %v2595_v8  ;;  %v1804_v15 = vadd.f32 %v2587_v62, %v1803_v10  ;;  %v1825_v16 = vadd.f32 %v1818_v11, %v1817_v3  ;;  %v1634_v45 = vmul.f32 %v2595_v8, %v2595_v8 }
 0x195   : > { %1610 = vst [vmem:[%s3464_s29 + $0x8] sm:$0xff] %v2596_v13  ;;  %v1617_v12 = vadd.f32 %v2596_v13, %v2594_v5  ;;  %v1632_v18 = vmul.f32 %v2596_v13, %v2596_v13 }
 0x196   : > { %v1826_v21 = vadd.f32 %v1825_v16, %v1819_v14  ;;  %v2591_v22 = vpop.f32.mrb[12].mxu1  ;;  %v1805_v23 = vadd.f32 %v2588_v4, %v1804_v15 }
 0x197   : > { %v1618_v26 = vadd.f32 %v2593_v1, %v1617_v12  ;;  %v1639_v27 = vadd.f32 %v1632_v18, %v1631_v19  ;;  %v2567_v28 = vpop.f32.mrb[4].mxu0  ;;  %1801 = vst [vmem:[%s3459_s28 + $0x30] sm:$0xff] %v2591_v22  ;;  %v1780_v29 = vpop.f32.mrb[13].mxu1  ;;  %v1823_v54 = vmul.f32 %v2591_v22, %v2591_v22 }
 0x198   : > { %v3473_v35 = vadd.f32 %v2567_v28, %v2447_v50  ;;  %v1586_v36 = vpop.f32.mrb[5].mxu0  ;;  %1799 = vst [vmem:[%s3459_s28 + $0x20] sm:$0xff] %v1780_v29  ;;  %v1806_v37 = vadd.f32 %v1805_v23, %v1780_v29  ;;  %v1821_v38 = vmul.f32 %v1780_v29, %v1780_v29  ;;  %v1827_v39 = vadd.f32 %v1826_v21, %v1820_v20  ;;  %v3476_v43 = vpop.f32.mrb[14].mxu1 }
 0x199   : > { %v1640_v46 = vadd.f32 %v1639_v27, %v1633_v24  ;;  %v2598_v47 = vadd.f32 %v1586_v36, %v838_v59  ;;  %v1619_v25 = vadd.f32 %v2595_v8, %v1618_v26  ;;  %v2568_v30 = vpop.f32.mrb[6].mxu0  ;;  %1802 = vst [vmem:[%s3459_s28 + $0x38] sm:$0xff] %v3476_v43  ;;  %v1783_v33 = vpop.f32.mrb[15].mxu1 }
 0x19a   : > { %1615 = vst [vmem:[%s3464_s29 + $0x30] sm:$0xff] %v3473_v35  ;;  %v1828_v48 = vadd.f32 %v1827_v39, %v1821_v38  ;;  %v2599_v32 = vadd.f32 %v2568_v30, %v2448_v60  ;;  %v1589_v41 = vpop.f32.mrb[7].mxu0  ;;  %1800 = vst [vmem:[%s3459_s28 + $0x28] sm:$0xff] %v1783_v33  ;;  %v1807_v42 = vadd.f32 %v1806_v37, %v1783_v33 }
 0x19b   : > { %1613 = vst [vmem:[%s3464_s29 + $0x20] sm:$0xff] %v2598_v47  ;;  %v1620_v44 = vadd.f32 %v2598_v47, %v1619_v25  ;;  %v1635_v34 = vmul.f32 %v2598_v47, %v2598_v47  ;;  %v1641_v17 = vadd.f32 %v1640_v46, %v1634_v45  ;;  %v2600_v49 = vadd.f32 %v1589_v41, %v3456_v61 }
 0x19c   : > { %1616 = vst [vmem:[%s3464_s29 + $0x38] sm:$0xff] %v2599_v32  ;;  %v1808_v51 = vadd.f32 %v2591_v22, %v1807_v42  ;;  %v1822_v52 = vmul.f32 %v1783_v33, %v1783_v33 }
 0x19d   : > { %v1642_v53 = vadd.f32 %v1641_v17, %v1635_v34  ;;  %1614 = vst [vmem:[%s3464_s29 + $0x28] sm:$0xff] %v2600_v49  ;;  %v1621_v55 = vadd.f32 %v2600_v49, %v1620_v44  ;;  %v1636_v56 = vmul.f32 %v2600_v49, %v2600_v49 }
 0x19e   : > { %v1809_v31 = vadd.f32 %v3476_v43, %v1808_v51  ;;  %v1829_v40 = vadd.f32 %v1828_v48, %v1822_v52 }
 0x19f   : > { %2808 = shalt.err (!%p2805_p3)
}
 0x1a0   : > { %s2809_s29 = scalar_lea.hbm %s3489_s13, 1024  ;;  %s2813_s17 = scalar_lea.hbm %s3657_s3, 2048 }
 0x1a1   : > { %p2810_p4 = scmp.ne.s32.totalorder %s3489_s13, %s2809_s29  ;;  %p2814_p9 = scmp.lt.u32.totalorder %s3489_s13, %s3657_s3 }
 0x1a2   : > { %p2815_p10 = scmp.lt.u32.totalorder %s2813_s17, %s2809_s29  ;;  %p2817_p12 = scmp.lt.u32.totalorder %s2809_s29, %s3489_s13 }
 0x1a3   : > { %p2811_p7 = pnand %p2810_p4, %p3033_p5 }
 0x1a4   : > { %p2816_p11 = por %p2815_p10, %p2814_p9 }
 0x1a5   : > { %p2812_p8 = pneg %p2811_p7 }
 0x1a6   : > { %p2818_p13 = por %p2817_p12, %p2816_p11 }
 0x1a8   : > { %p2819_p0 = pnand %p2818_p13, %p2812_p8 }
 0x1aa   : > { %2822 = shalt.err (!%p2819_p0)
}
 0x1ab   : > { %s3663_s15 = smov 128   ;;  %s3664_s11 = smov 8   ;;  %v1637_v57 = vmul.f32 %v3473_v35, %v3473_v35  ;;  %v1622_v58 = vadd.f32 %v3473_v35, %v1621_v55  ;;  %v1643_v50 = vadd.f32 %v1642_v53, %v1636_v56  ;;  %v1824_v59 = vmul.f32 %v3476_v43, %v3476_v43 }
 0x1ac   : > { %2658 = dma.vmem_to_hbm [thread:$0]  (%p3033_p5), %s3493_s10, 1024, %s3489_s13, %s1841_s14, %s3663_s15, %s3663_s15, %s3664_s11   ;;  %v1810_v60 = vrot.slane %v1809_v31, 4  ;;  %v1830_v61 = vadd.f32 %v1829_v40, %v1823_v54  ;;  %v1638_v62 = vmul.f32 %v2599_v32, %v2599_v32 }
 0x1ad   : > { %v1623_v63 = vadd.f32 %v2599_v32, %v1622_v58  ;;  %v1644_v0 = vadd.f32 %v1643_v50, %v1637_v57  ;;  %s2225_s9 = sshll.u32 %s3014_s25, 7  ;;  %s1914_s10 = sshll.u32 %s3453_s20, 4  ;;  %s3541_s10 = int_to_ptr.vmem [resolvable:$true] %s1914_s10 }
 0x1ae   : > { %v1811_v1 = vadd.f32 %v1810_v60, %v1809_v31  ;;  %v1831_v2 = vadd.f32 %v1830_v61, %v1824_v59  ;;  %s1898_s13 = sshll.u32 %s3459_s28, 4  ;;  %s1885_s14 = sshll.u32 %s3450_s18, 4  ;;  %s3549_s14 = int_to_ptr.vmem [resolvable:$true] %s1885_s14  ;;  %s3551_s13 = int_to_ptr.vmem [resolvable:$true] %s1898_s13 }
 0x1af   : > { %v1624_v3 = vrot.slane %v1623_v63, 4  ;;  %v1645_v4 = vadd.f32 %v1644_v0, %v1638_v62  ;;  %s3539_s17 = scalar_lea.hbm %s3660_s6, %s2225_s9  ;;  %s3547_s15 = scalar_lea.hbm %s3658_s4, %s2225_s9 }
 0x1b0   : > { %v1812_v5 = vrot.slane %v1811_v1, 2  ;;  %v1832_v6 = vrot.slane %v1831_v2, 4  ;;  %s3671_s11 = sshll.u32 %s3014_s25, 10  ;;  %s1856_s0 = scalar_lea.sflag [#allocation8], %s3447_s16 }
 0x1b1   : > { %v1625_v7 = vadd.f32 %v1624_v3, %v1623_v63  ;;  %v1646_v8 = vrot.slane %v1645_v4, 4  ;;  %s3558_s26 = scalar_lea.hbm %s3659_s5, %s3671_s11  ;;  %s2823_s1 = scalar_lea.vmem %s3541_s10, 128 }
 0x1b2   : > { %v1813_v9 = vadd.f32 %v1812_v5, %v1811_v1  ;;  %v1833_v10 = vadd.f32 %v1832_v6, %v1831_v2  ;;  %p2824_p1 = scmp.ne.s32.totalorder %s3541_s10, %s2823_s1  ;;  %s2955_s9 = smov [#allocation7]  }
 0x1b3   : > { %v1626_v11 = vrot.slane %v1625_v7, 2  ;;  %v1647_v13 = vadd.f32 %v1646_v8, %v1645_v4  ;;  %s2827_s28 = sshll.u32 %s2955_s9, 4  ;;  %s2828_s28 = int_to_ptr.vmem [resolvable:$false] %s2827_s28 }
 0x1b4   : > { %v1814_v14 = vrot.slane %v1813_v9, 1  ;;  %v1834_v15 = vrot.slane %v1833_v10, 2  ;;  %p2825_p2 = pnand %p2824_p1, %p3033_p5  ;;  %s2829_s19 = scalar_lea.vmem %s2828_s28, 256 }
 0x1b5   : > { %v1627_v16 = vadd.f32 %v1626_v11, %v1625_v7  ;;  %v1648_v19 = vrot.slane %v1647_v13, 2  ;;  %p2830_p4 = scmp.lt.s32.totalorder %s3541_s10, %s2828_s28  ;;  %p2831_p7 = scmp.lt.s32.totalorder %s2829_s19, %s2823_s1 }
 0x1b6   : > { %v1835_v12 = vadd.f32 %v1834_v15, %v1833_v10  ;;  %v1815_v18 = vadd.f32 %v1814_v14, %v1813_v9  ;;  %p2826_p3 = pneg %p2825_p2 }
 0x1b7   : > { %v1628_v20 = vrot.slane %v1627_v16, 1  ;;  %v1649_v21 = vadd.f32 %v1648_v19, %v1647_v13  ;;  %p2832_p8 = por %p2831_p7, %p2830_p4 }
 0x1b8   : > { %1816 = vst [vmem:[%s3453_s20] sm:$0x1] %v1815_v18  ;;  %v1836_v22 = vrot.slane %v1835_v12, 1 }
 0x1b9   : > { %v1629_v23 = vadd.f32 %v1628_v20, %v1627_v16  ;;  %v1650_v24 = vrot.slane %v1649_v21, 1  ;;  %p2833_p9 = pnand %p2832_p8, %p2826_p3 }
 0x1ba   : > { %v1837_v26 = vadd.f32 %v1836_v22, %v1835_v12 }
 0x1bb   : > { %1630 = vst [vmem:[%s3450_s18] sm:$0x1] %v1629_v23  ;;  %v1651_v27 = vadd.f32 %v1650_v24, %v1649_v21 }
 0x1bc   : > { %1838 = vst [vmem:[%s3453_s20 + $0x1] sm:$0x1] %v1837_v26 }
 0x1bd   : > { %1652 = vst [vmem:[%s3450_s18 + $0x1] sm:$0x1] %v1651_v27 }
 0x1be   : > { %2836 = shalt.err (!%p2833_p9)
}
 0x1bf   : > { %s2837_s16 = scalar_lea.hbm %s3539_s17, 128  ;;  %s2841_s11 = scalar_lea.hbm %s3660_s6, 256 }
 0x1c0   : > { %p2838_p10 = scmp.ne.s32.totalorder %s3539_s17, %s2837_s16  ;;  %p2842_p13 = scmp.lt.u32.totalorder %s3539_s17, %s3660_s6 }
 0x1c1   : > { %p2843_p0 = scmp.lt.u32.totalorder %s2841_s11, %s2837_s16  ;;  %p2845_p2 = scmp.lt.u32.totalorder %s2837_s16, %s3539_s17 }
 0x1c2   : > { %p2839_p11 = pnand %p2838_p10, %p3033_p5 }
 0x1c3   : > { %p2844_p1 = por %p2843_p0, %p2842_p13 }
 0x1c4   : > { %p2840_p12 = pneg %p2839_p11 }
 0x1c5   : > { %p2846_p3 = por %p2845_p2, %p2844_p1 }
 0x1c7   : > { %p2847_p4 = pnand %p2846_p3, %p2840_p12 }
 0x1c9   : > { %2850 = shalt.err (!%p2847_p4)
}
 0x1ca   : > { %2661 = dma.vmem_to_hbm [thread:$0]  (%p3033_p5), %s3541_s10, 128, %s3539_s17, %s1856_s0  }
 0x1cb   : > { %s3672_s1 = sand.u32 1, %s3014_s25   ;;  %s2851_s28 = scalar_lea.vmem %s3549_s14, 128 }
 0x1cc   : > { %s3586_s9 = scalar_lea.sflag [#allocation5], %s3672_s1  ;;  %p2852_p7 = scmp.ne.s32.totalorder %s3549_s14, %s2851_s28 }
 0x1cd   : > { %s2956_s19 = smov [#allocation4]  }
 0x1ce   : > { %p2853_p8 = pnand %p2852_p7, %p3033_p5  ;;  %s2855_s16 = sshll.u32 %s2956_s19, 4  ;;  %s2856_s16 = int_to_ptr.vmem [resolvable:$false] %s2855_s16 }
 0x1cf   : > { %s2857_s18 = scalar_lea.vmem %s2856_s16, 256  ;;  %p2858_p10 = scmp.lt.s32.totalorder %s3549_s14, %s2856_s16 }
 0x1d0   : > { %p2854_p9 = pneg %p2853_p8  ;;  %p2859_p11 = scmp.lt.s32.totalorder %s2857_s18, %s2851_s28 }
 0x1d2   : > { %p2860_p12 = por %p2859_p11, %p2858_p10 }
 0x1d4   : > { %p2861_p13 = pnand %p2860_p12, %p2854_p9 }
 0x1d6   : > { %2864 = shalt.err (!%p2861_p13)
}
 0x1d7   : > { %s2865_s0 = scalar_lea.hbm %s3547_s15, 128  ;;  %s2869_s17 = scalar_lea.hbm %s3658_s4, 256 }
 0x1d8   : > { %p2866_p0 = scmp.ne.s32.totalorder %s3547_s15, %s2865_s0  ;;  %p2870_p3 = scmp.lt.u32.totalorder %s3547_s15, %s3658_s4 }
 0x1d9   : > { %p2871_p4 = scmp.lt.u32.totalorder %s2869_s17, %s2865_s0  ;;  %p2873_p8 = scmp.lt.u32.totalorder %s2865_s0, %s3547_s15 }
 0x1da   : > { %p2867_p1 = pnand %p2866_p0, %p3033_p5 }
 0x1db   : > { %p2872_p7 = por %p2871_p4, %p2870_p3 }
 0x1dc   : > { %p2868_p2 = pneg %p2867_p1 }
 0x1dd   : > { %p2874_p9 = por %p2873_p8, %p2872_p7 }
 0x1df   : > { %p2875_p10 = pnand %p2874_p9, %p2868_p2 }
 0x1e1   : > { %2878 = shalt.err (!%p2875_p10)
}
 0x1e2   : > { %2659 = dma.vmem_to_hbm [thread:$0]  (%p3033_p5), %s3549_s14, 128, %s3547_s15, %s3586_s9  }
 0x1e3   : > { %s2879_s29 = scalar_lea.vmem %s3551_s13, 1024  ;;  %s2957_s12 = smov [#allocation6]  }
 0x1e4   : > { %p2880_p11 = scmp.ne.s32.totalorder %s3551_s13, %s2879_s29  ;;  %s2883_s1 = sshll.u32 %s2957_s12, 4  ;;  %s2884_s1 = int_to_ptr.vmem [resolvable:$false] %s2883_s1 }
 0x1e5   : > { %s2885_s28 = scalar_lea.vmem %s2884_s1, 2048  ;;  %p2886_p0 = scmp.lt.s32.totalorder %s3551_s13, %s2884_s1 }
 0x1e6   : > { %p2881_p12 = pnand %p2880_p11, %p3033_p5  ;;  %p2887_p1 = scmp.lt.s32.totalorder %s2885_s28, %s2879_s29 }
 0x1e8   : > { %p2882_p13 = pneg %p2881_p12  ;;  %p2888_p2 = por %p2887_p1, %p2886_p0 }
 0x1ea   : > { %p2889_p3 = pnand %p2888_p2, %p2882_p13 }
 0x1ec   : > { %2892 = shalt.err (!%p2889_p3)
}
 0x1ed   : > { %s2893_s15 = scalar_lea.hbm %s3558_s26, 1024  ;;  %s2897_s16 = scalar_lea.hbm %s3659_s5, 2048 }
 0x1ee   : > { %p2894_p4 = scmp.ne.s32.totalorder %s3558_s26, %s2893_s15  ;;  %p2898_p9 = scmp.lt.u32.totalorder %s3558_s26, %s3659_s5 }
 0x1ef   : > { %p2899_p10 = scmp.lt.u32.totalorder %s2897_s16, %s2893_s15  ;;  %p2901_p12 = scmp.lt.u32.totalorder %s2893_s15, %s3558_s26 }
 0x1f0   : > { %p2895_p7 = pnand %p2894_p4, %p3033_p5 }
 0x1f1   : > { %p2900_p11 = por %p2899_p10, %p2898_p9 }
 0x1f2   : > { %p2896_p8 = pneg %p2895_p7 }
 0x1f3   : > { %p2902_p13 = por %p2901_p12, %p2900_p11 }
 0x1f5   : > { %p2903_p0 = pnand %p2902_p13, %p2896_p8 }
 0x1f7   : > { %2906 = shalt.err (!%p2903_p0)
}
 0x1f8   : > { %s3673_s25 = smov 8   ;;  %s3674_s10 = smov 128  }
 0x1f9   : > { %2660 = dma.vmem_to_hbm [thread:$0]  (%p3033_p5), %s3551_s13, 1024, %s3558_s26, %s3586_s9, %s3674_s10, %s3674_s10, %s3673_s25  }
 0x1fa PF: > { %p2679_p1 = scmp.ge.s32.totalorder %s2949_s24, 2  ;;  %s1926_s17 = sand.u32 1, %s2937_s21  }
 0x1fb   : > { %s1927_s20 = scalar_lea.sflag [#allocation3], %s1926_s17 }
 0x1fc   : > { %p2667_p2 = pnand %p2679_p1, %p3037_p6 }
 0x1fe   : > { %2924 = dma.done.wait (!%p2667_p2), %s1927_s20, 1024  }
 0x1ff   : > { %2926 = vsyncadd (!%p2667_p2), %s1927_s20, 4294966272  ;;  %s3675_s7 = sadd.s32 4294967294, %s2949_s24  }
 0x200   : > { %s1935_s11 = sand.u32 1, %s3675_s7  }
 0x201   : > { %s1936_s29 = scalar_lea.sflag [#allocation5], %s1935_s11 }
 0x202   : > { %2928 = dma.done.wait (!%p2667_p2), %s1936_s29, 1152  }
 0x203   : > { %2930 = vsyncadd (!%p2667_p2), %s1936_s29, 4294966144  ;;  %s1954_s12 = scalar_lea.sflag [#allocation8], %s1926_s17 }
 0x204   : > { %2932 = dma.done.wait (!%p2667_p2), %s1954_s12, 128  }
 0x205   : > { %2934 = vsyncadd (!%p2667_p2), %s1954_s12, 4294967168  ;;  %p23_p5 = scmp.ge.s32.totalorder %s3018_s27, 4   ;;  %s3676_s21 = smov %s2941_s22 }
 0x206   : > { %s3677_s22 = smov %s2945_s23  ;;  %s3678_s23 = smov %s3031_s30 }
 0x207   : > { %s3679_s24 = smov %s3018_s27  ;;  %25 = sbr.rel (!%p23_p5) target bundleno = 10 (0xa), region = 121 }
 0x20e   :  { %1959 = vsyncpa [#allocation3], 1 }
 0x20f   :  { %1961 = vsyncpa [#allocation3 + $0x1], 1 }
 0x210   :  { %1962 = vsyncpa [#allocation5], 1 }
 0x211   :  { %1964 = vsyncpa [#allocation5 + $0x1], 1 }
 0x212   :  { %1965 = vsyncpa [#allocation8], 1 }
 0x213   :  { %1967 = vsyncpa [#allocation8 + $0x1], 1 }

</bundles_post_ra>
